<compile_context>
chip_gen: v6e
topology: v6e:2x2x1
jax: 0.10.0
libtpu: 0.0.40
codegen_flags: <defaults>
</compile_context>

<pallas_src>
import jax
import jax.numpy as jnp
from jax.experimental import pallas as pl
from jax.experimental.pallas import tpu as pltpu

BN_EPS = 1e-5
LANE = 128
SUBLANE = 8
VMEM_LIMIT_BYTES = 48 * 1024 * 1024


def _round_up(x, m):
  return (x + m - 1) // m * m


def _choose_tile_ho(ho, wo, max_rows=1024):
  """Largest divisor of ho whose (tile_ho * wo) output-row count <= max_rows."""
  best = 1
  for d in range(1, ho + 1):
    if ho % d == 0 and d * wo <= max_rows:
      best = d
  return best


# ----------------------------- Pallas kernels ------------------------------- #
def _make_conv_stats_kernel(ksize, stride, tile_ho, wo, qh, cinp, coutp, nph):
  """Direct conv (k*k shifted-window MXU matmuls) + partial BN statistics."""

  def kernel(x_ref, w_ref, y_ref, sum_ref, sq_ref):
    row0 = pl.multiple_of(pl.program_id(1) * tile_ho, tile_ho)
    acc = jnp.zeros((tile_ho * wo, coutp), jnp.float32)
    for tap in range(ksize * ksize):
      ky, kx = tap // ksize, tap % ksize
      py, oy = ky % stride, ky // stride
      px, ox = kx % stride, kx // stride
      ph = py * nph + px
      # contiguous row band of one stride-phase plane (image is VMEM-resident)
      band = x_ref[0, pl.ds(ph * qh + row0 + oy, tile_ho)]   # (tile_ho, qw, cinp)
      band = band[:, ox:ox + wo, :]                           # (tile_ho, wo, cinp)
      acc = acc + jnp.dot(band.reshape(tile_ho * wo, cinp), w_ref[tap],
                          preferred_element_type=jnp.float32)
    y_ref[...] = acc.reshape(1, tile_ho, wo, coutp).astype(y_ref.dtype)
    # per-tile partial BN statistics; uncentered -> exact combine in JAX.
    sum_ref[...] = jnp.sum(acc, axis=0, keepdims=True).reshape(1, 1, 1, coutp)
    sq_ref[...] = jnp.sum(acc * acc, axis=0, keepdims=True).reshape(1, 1, 1, coutp)

  return kernel


def _make_bn_apply_kernel(has_residual, apply_relu, coutp):
  def kernel(*refs):
    if has_residual:
      y_ref, sc_ref, sh_ref, r_ref, o_ref = refs
    else:
      y_ref, sc_ref, sh_ref, o_ref = refs
      r_ref = None
    y = y_ref[...].astype(jnp.float32)
    sc = sc_ref[...].reshape(1, 1, 1, coutp)
    sh = sh_ref[...].reshape(1, 1, 1, coutp)
    out = y * sc + sh                       # folded BN: one FMA per element
    if has_residual:
      out = out + r_ref[...].astype(jnp.float32)
    if apply_relu:
      out = jnp.maximum(out, 0.0)
    o_ref[...] = out.astype(o_ref.dtype)

  return kernel


# --------------------------- pallas_call wrappers ---------------------------- #
def _conv_stats_call(x_ph, w_taps, ksize, stride, ho, wo, tile_ho, qh, nph):
  n = x_ph.shape[0]
  cinp = x_ph.shape[-1]
  coutp = w_taps.shape[-1]
  t = ho // tile_ho
  return pl.pallas_call(
      _make_conv_stats_kernel(ksize, stride, tile_ho, wo, qh, cinp, coutp, nph),
      out_shape=(jax.ShapeDtypeStruct((n, ho, wo, coutp), jnp.bfloat16),
                 jax.ShapeDtypeStruct((n, t, 1, coutp), jnp.float32),
                 jax.ShapeDtypeStruct((n, t, 1, coutp), jnp.float32)),
      grid=(n, t),
      in_specs=[
          # whole phased image resident across the ho-tile sweep of one image
          pl.BlockSpec((1,) + tuple(x_ph.shape[1:]), lambda i, j: (i, 0, 0, 0)),
          # folded per-tap weights resident across the whole grid
          pl.BlockSpec(tuple(w_taps.shape), lambda i, j: (0, 0, 0)),
      ],
      out_specs=(
          pl.BlockSpec((1, tile_ho, wo, coutp), lambda i, j: (i, j, 0, 0)),
          pl.BlockSpec((1, 1, 1, coutp), lambda i, j: (i, j, 0, 0)),
          pl.BlockSpec((1, 1, 1, coutp), lambda i, j: (i, j, 0, 0)),
      ),
      compiler_params=pltpu.CompilerParams(
          dimension_semantics=("parallel", "parallel"),
          vmem_limit_bytes=VMEM_LIMIT_BYTES),
  )(x_ph, w_taps)


def _bn_apply_call(y, scale, shift, residual, apply_relu, tile_ho, out_dtype):
  n, ho, wo, coutp = y.shape
  t = ho // tile_ho
  args = [y, scale.reshape(1, coutp), shift.reshape(1, coutp)]
  in_specs = [
      pl.BlockSpec((1, tile_ho, wo, coutp), lambda i, j: (i, j, 0, 0)),
      pl.BlockSpec((1, coutp), lambda i, j: (0, 0)),            # resident scale
      pl.BlockSpec((1, coutp), lambda i, j: (0, 0)),            # resident shift
  ]
  if residual is not None:
    args.append(residual)
    in_specs.append(pl.BlockSpec((1, tile_ho, wo, coutp), lambda i, j: (i, j, 0, 0)))
  return pl.pallas_call(
      _make_bn_apply_kernel(residual is not None, apply_relu, coutp),
      out_shape=jax.ShapeDtypeStruct((n, ho, wo, coutp), out_dtype),
      grid=(n, t),
      in_specs=in_specs,
      out_specs=pl.BlockSpec((1, tile_ho, wo, coutp), lambda i, j: (i, j, 0, 0)),
      compiler_params=pltpu.CompilerParams(
          dimension_semantics=("parallel", "parallel"),
          vmem_limit_bytes=VMEM_LIMIT_BYTES),
  )(*args)


# ------------------------------ JAX glue ------------------------------------- #
def _phase_split(x_nhwc, ksize, stride, padding, cinp):
  """Pad + split into stride-phase planes so in-kernel tap reads are contiguous.

  Returns (N, nph*nph*Qh, Qw, cinp) bf16 where plane (py, px) occupies rows
  [(py*nph+px)*Qh, ...) and plane[q, r, :] = x_pad[stride*q+py, stride*r+px, :].
  For stride=1 this is just the spatially padded image (one plane, no copy blowup).
  """
  n, h, w, c = x_nhwc.shape
  ho = (h + 2 * padding - ksize) // stride + 1
  wo = (w + 2 * padding - ksize) // stride + 1
  off = (ksize - 1) // stride
  qh, qw = ho + off, wo + off
  pad_b = max(0, stride * qh - h - padding)
  pad_r = max(0, stride * qw - w - padding)
  xp = jnp.pad(x_nhwc.astype(jnp.bfloat16),
               ((0, 0), (padding, pad_b), (padding, pad_r), (0, cinp - c)))
  xp = xp[:, :stride * qh, :stride * qw, :]
  nph = min(stride, ksize)
  planes = [xp[:, py::stride, px::stride, :][:, :qh, :qw, :]
            for py in range(nph) for px in range(nph)]
  return jnp.concatenate(planes, axis=1), ho, wo, qh, nph


def _fold_weight(w_oihw, cinp, coutp):
  """PyTorch (Cout, Cin, KH, KW) -> per-tap matmul weights (KH*KW, cinp, coutp)."""
  cout, cin, kh, kw = w_oihw.shape
  w = jnp.transpose(w_oihw, (2, 3, 1, 0)).reshape(kh * kw, cin, cout)
  w = jnp.pad(w, ((0, 0), (0, cinp - cin), (0, coutp - cout)))
  return w.astype(jnp.bfloat16)


def _bn_scale_shift(sums, sumsqs, gamma_p, beta_p, m_total):
  """Combine per-tile (sum, sum-of-squares) into full-batch BN scale/shift."""
  mean = jnp.sum(sums, axis=(0, 1, 2)) / m_total
  ex2 = jnp.sum(sumsqs, axis=(0, 1, 2)) / m_total
  var = jnp.maximum(ex2 - mean * mean, 0.0)       # biased variance (training BN)
  scale = gamma_p * jax.lax.rsqrt(var + BN_EPS)
  shift = beta_p - mean * scale
  return scale, shift


def _conv_bn(x_nhwc, w_oihw, gamma, beta, *, ksize, stride, padding,
             residual=None, apply_relu=True, out_dtype=jnp.bfloat16):
  n, h, w, cin = x_nhwc.shape
  cout = w_oihw.shape[0]
  cinp = _round_up(cin, SUBLANE)
  coutp = _round_up(cout, LANE)

  x_ph, ho, wo, qh, nph = _phase_split(x_nhwc, ksize, stride, padding, cinp)
  w_taps = _fold_weight(w_oihw, cinp, coutp)
  gamma_p = jnp.pad(gamma.astype(jnp.float32), (0, coutp - cout))
  beta_p = jnp.pad(beta.astype(jnp.float32), (0, coutp - cout))

  tile_ho = _choose_tile_ho(ho, wo)
  y, sums, sqs = _conv_stats_call(x_ph, w_taps, ksize, stride, ho, wo,
                                  tile_ho, qh, nph)
  scale, shift = _bn_scale_shift(sums, sqs, gamma_p, beta_p, float(n * ho * wo))
  if residual is not None:
    assert residual.shape == (n, ho, wo, coutp), (residual.shape, (n, ho, wo, coutp))
  out = _bn_apply_call(y, scale, shift, residual, apply_relu, tile_ho, out_dtype)
  return out                                        # (n, ho, wo, coutp)


def basic_block_forward(x_nchw, params, stride=1, downsample=False):
  """Forward pass of BasicBlock; input/output in PyTorch NCHW layout."""
  x = jnp.transpose(x_nchw, (0, 2, 3, 1)).astype(jnp.float32)   # NCHW -> NHWC
  nb, h, w, cin = x.shape
  cout = params["w1"].shape[0]
  coutp = _round_up(cout, LANE)

  # conv1 (3x3, stride, pad=1) + bn1 + relu -> bf16, 128-lane-padded slab kept
  y1 = _conv_bn(x, params["w1"], params["g1"], params["b1"],
                ksize=3, stride=stride, padding=1, apply_relu=True,
                out_dtype=jnp.bfloat16)

  # identity / downsample residual in the same padded NHWC bf16 layout
  if downsample:
    ident = _conv_bn(x, params["wd"], params["gd"], params["bd"],
                     ksize=1, stride=stride, padding=0, apply_relu=False,
                     out_dtype=jnp.bfloat16)
  else:
    assert stride == 1 and cin == cout, "identity path needs stride=1, cin==cout"
    ident = jnp.pad(x.astype(jnp.bfloat16),
                    ((0, 0), (0, 0), (0, 0), (0, coutp - cin)))

  # conv2 (3x3, stride=1, pad=1) + bn2 + residual add + relu (f32 final output)
  out = _conv_bn(y1, params["w2"], params["g2"], params["b2"],
                 ksize=3, stride=1, padding=1, residual=ident,
                 apply_relu=True, out_dtype=jnp.float32)
  out = out[..., :cout]                              # drop lane padding once, at the end
  return jnp.transpose(out, (0, 3, 1, 2))            # NHWC -> NCHW


# --------------------------- pure-JAX reference ------------------------------ #
def _ref_conv(x_nhwc, w_oihw, stride, padding):
  return jax.lax.conv_general_dilated(
      x_nhwc, jnp.transpose(w_oihw, (2, 3, 1, 0)),
      window_strides=(stride, stride),
      padding=[(padding, padding), (padding, padding)],
      dimension_numbers=("NHWC", "HWIO", "NHWC"))


def _ref_bn(x, g, b):
  mean = jnp.mean(x, axis=(0, 1, 2), keepdims=True)
  var = jnp.mean((x - mean) ** 2, axis=(0, 1, 2), keepdims=True)
  return (x - mean) * jax.lax.rsqrt(var + BN_EPS) * g + b


def basic_block_ref(x_nchw, params, stride, downsample):
  x = jnp.transpose(x_nchw, (0, 2, 3, 1))
  y = jnp.maximum(_ref_bn(_ref_conv(x, params["w1"], stride, 1),
                          params["g1"], params["b1"]), 0.0)
  y = _ref_bn(_ref_conv(y, params["w2"], 1, 1), params["g2"], params["b2"])
  if downsample:
    i = _ref_bn(_ref_conv(x, params["wd"], stride, 0), params["gd"], params["bd"])
  else:
    i = x
  return jnp.transpose(jnp.maximum(y + i, 0.0), (0, 3, 1, 2))


# --------------------------------- main -------------------------------------- #
if __name__ == "__main__":
  key = jax.random.PRNGKey(0)
  ks = jax.random.split(key, 10)

  N, Cin, H, W = 2, 4, 16, 16
  Cout, stride = 8, 2   # downsampling block: 1x1 conv + bn on the identity path

  params = {
      "w1": 0.1 * jax.random.normal(ks[0], (Cout, Cin, 3, 3), jnp.float32),
      "g1": 1.0 + 0.1 * jax.random.normal(ks[1], (Cout,), jnp.float32),
      "b1": 0.1 * jax.random.normal(ks[2], (Cout,), jnp.float32),
      "w2": 0.1 * jax.random.normal(ks[3], (Cout, Cout, 3, 3), jnp.float32),
      "g2": 1.0 + 0.1 * jax.random.normal(ks[4], (Cout,), jnp.float32),
      "b2": 0.1 * jax.random.normal(ks[5], (Cout,), jnp.float32),
      "wd": 0.1 * jax.random.normal(ks[6], (Cout, Cin, 1, 1), jnp.float32),
      "gd": 1.0 + 0.1 * jax.random.normal(ks[7], (Cout,), jnp.float32),
      "bd": 0.1 * jax.random.normal(ks[8], (Cout,), jnp.float32),
  }
  x = jax.random.normal(ks[9], (N, Cin, H, W), jnp.float32)

  # downsampling block: (2,4,16,16) -> (2,8,8,8)
  out = jax.block_until_ready(
      basic_block_forward(x, params, stride=stride, downsample=True))
  ref = jax.block_until_ready(basic_block_ref(x, params, stride, True))
  assert out.shape == (N, Cout, H // stride, W // stride)
  assert jnp.allclose(out, ref, atol=5e-2, rtol=5e-2)

  # identity block: stride=1, in_channels == out_channels, no downsample
  params_nd = {k: v for k, v in params.items() if not k.endswith("d")}
  params_nd["w1"] = 0.1 * jax.random.normal(ks[0], (Cout, Cout, 3, 3), jnp.float32)
  x2 = jax.random.normal(ks[9], (N, Cout, H, W), jnp.float32)
  out2 = jax.block_until_ready(
      basic_block_forward(x2, params_nd, stride=1, downsample=False))
  ref2 = jax.block_until_ready(basic_block_ref(x2, params_nd, 1, False))
  assert out2.shape == (N, Cout, H, W)
  assert jnp.allclose(out2, ref2, atol=5e-2, rtol=5e-2)

  print("KERNEL_OK")
</pallas_src>

<mosaic_0001>
module attributes {stable_mosaic.version = 11 : i64} {
  func.func @kernel(%arg0: i32, %arg1: i32, %arg2: memref<1x36x9x8xbf16, #tpu.memory_space<vmem>>, %arg3: memref<9x8x128xbf16, #tpu.memory_space<vmem>>, %arg4: memref<1x8x8x128xbf16, #tpu.memory_space<vmem>>, %arg5: memref<1x1x1x128xf32, #tpu.memory_space<vmem>>, %arg6: memref<1x1x1x128xf32, #tpu.memory_space<vmem>>) attributes {dimension_semantics = [#tpu.dimension_semantics<parallel>, #tpu.dimension_semantics<parallel>], iteration_bounds = array<i64: 2, 1>, scalar_prefetch = 0 : i64, scratch_operands = 0 : i64, tpu.core_type = #tpu.core_type<tc>, window_params = [{transform_indices = @transform_0, window_bounds = array<i64: 1, 36, 9, 8>}, {pipeline_mode = #tpu.pipeline_mode<synchronous>, transform_indices = @transform_1, window_bounds = array<i64: 9, 8, 128>}, {transform_indices = @transform_2, window_bounds = array<i64: 1, 8, 8, 128>}, {transform_indices = @transform_3, window_bounds = array<i64: 1, 1, 1, 128>}, {transform_indices = @transform_4, window_bounds = array<i64: 1, 1, 1, 128>}]} {
    %c8_i32 = arith.constant 8 : i32
    %0 = arith.muli %arg1, %c8_i32 : i32
    %1 = tpu.assume_multiple %0, 8 : i32
    %cst = arith.constant 0.000000e+00 : f32
    %2 = vector.broadcast %cst : f32 to vector<64x128xf32>
    %c0_i32 = arith.constant 0 : i32
    %3 = arith.addi %c0_i32, %1 : i32
    %c0_i32_0 = arith.constant 0 : i32
    %4 = arith.addi %3, %c0_i32_0 : i32
    %c0 = arith.constant 0 : index
    %5 = arith.index_cast %4 : i32 to index
    %c0_1 = arith.constant 0 : index
    %c0_2 = arith.constant 0 : index
    %6 = vector.load %arg2[%c0, %5, %c0_1, %c0_2] : memref<1x36x9x8xbf16, #tpu.memory_space<vmem>>, vector<1x8x9x8xbf16>
    %7 = vector.shape_cast %6 : vector<1x8x9x8xbf16> to vector<8x9x8xbf16>
    %8 = vector.extract_strided_slice %7 {offsets = [0, 0, 0], sizes = [8, 8, 8], strides = [1, 1, 1]} : vector<8x9x8xbf16> to vector<8x8x8xbf16>
    %9 = vector.shape_cast %8 : vector<8x8x8xbf16> to vector<64x8xbf16>
    %c0_3 = arith.constant 0 : index
    %c0_4 = arith.constant 0 : index
    %c0_5 = arith.constant 0 : index
    %10 = vector.load %arg3[%c0_3, %c0_4, %c0_5] : memref<9x8x128xbf16, #tpu.memory_space<vmem>>, vector<1x8x128xbf16>
    %11 = vector.shape_cast %10 : vector<1x8x128xbf16> to vector<8x128xbf16>
    %cst_6 = arith.constant dense<0.000000e+00> : vector<64x128xf32>
    %12 = tpu.matmul %9, %11, %cst_6 {dimension_numbers = #tpu.dot_dimension_numbers<[1], [0], [0], [1], [0, 0, 1, 1], [], []>} : vector<64x8xbf16>, vector<8x128xbf16>, vector<64x128xf32> -> vector<64x128xf32>
    %13 = arith.addf %2, %12 : vector<64x128xf32>
    %c9_i32 = arith.constant 9 : i32
    %14 = arith.addi %c9_i32, %1 : i32
    %c0_i32_7 = arith.constant 0 : i32
    %15 = arith.addi %14, %c0_i32_7 : i32
    %c0_8 = arith.constant 0 : index
    %16 = arith.index_cast %15 : i32 to index
    %c0_9 = arith.constant 0 : index
    %c0_10 = arith.constant 0 : index
    %17 = vector.load %arg2[%c0_8, %16, %c0_9, %c0_10] : memref<1x36x9x8xbf16, #tpu.memory_space<vmem>>, vector<1x8x9x8xbf16>
    %18 = vector.shape_cast %17 : vector<1x8x9x8xbf16> to vector<8x9x8xbf16>
    %19 = vector.extract_strided_slice %18 {offsets = [0, 0, 0], sizes = [8, 8, 8], strides = [1, 1, 1]} : vector<8x9x8xbf16> to vector<8x8x8xbf16>
    %20 = vector.shape_cast %19 : vector<8x8x8xbf16> to vector<64x8xbf16>
    %c1 = arith.constant 1 : index
    %c0_11 = arith.constant 0 : index
    %c0_12 = arith.constant 0 : index
    %21 = vector.load %arg3[%c1, %c0_11, %c0_12] : memref<9x8x128xbf16, #tpu.memory_space<vmem>>, vector<1x8x128xbf16>
    %22 = vector.shape_cast %21 : vector<1x8x128xbf16> to vector<8x128xbf16>
    %cst_13 = arith.constant dense<0.000000e+00> : vector<64x128xf32>
    %23 = tpu.matmul %20, %22, %cst_13 {dimension_numbers = #tpu.dot_dimension_numbers<[1], [0], [0], [1], [0, 0, 1, 1], [], []>} : vector<64x8xbf16>, vector<8x128xbf16>, vector<64x128xf32> -> vector<64x128xf32>
    %24 = arith.addf %13, %23 : vector<64x128xf32>
    %c0_i32_14 = arith.constant 0 : i32
    %25 = arith.addi %c0_i32_14, %1 : i32
    %c0_i32_15 = arith.constant 0 : i32
    %26 = arith.addi %25, %c0_i32_15 : i32
    %c0_16 = arith.constant 0 : index
    %27 = arith.index_cast %26 : i32 to index
    %c0_17 = arith.constant 0 : index
    %c0_18 = arith.constant 0 : index
    %28 = vector.load %arg2[%c0_16, %27, %c0_17, %c0_18] : memref<1x36x9x8xbf16, #tpu.memory_space<vmem>>, vector<1x8x9x8xbf16>
    %29 = vector.shape_cast %28 : vector<1x8x9x8xbf16> to vector<8x9x8xbf16>
    %30 = vector.extract_strided_slice %29 {offsets = [0, 1, 0], sizes = [8, 8, 8], strides = [1, 1, 1]} : vector<8x9x8xbf16> to vector<8x8x8xbf16>
    %31 = vector.shape_cast %30 : vector<8x8x8xbf16> to vector<64x8xbf16>
    %c2 = arith.constant 2 : index
    %c0_19 = arith.constant 0 : index
    %c0_20 = arith.constant 0 : index
    %32 = vector.load %arg3[%c2, %c0_19, %c0_20] : memref<9x8x128xbf16, #tpu.memory_space<vmem>>, vector<1x8x128xbf16>
    %33 = vector.shape_cast %32 : vector<1x8x128xbf16> to vector<8x128xbf16>
    %cst_21 = arith.constant dense<0.000000e+00> : vector<64x128xf32>
    %34 = tpu.matmul %31, %33, %cst_21 {dimension_numbers = #tpu.dot_dimension_numbers<[1], [0], [0], [1], [0, 0, 1, 1], [], []>} : vector<64x8xbf16>, vector<8x128xbf16>, vector<64x128xf32> -> vector<64x128xf32>
    %35 = arith.addf %24, %34 : vector<64x128xf32>
    %c18_i32 = arith.constant 18 : i32
    %36 = arith.addi %c18_i32, %1 : i32
    %c0_i32_22 = arith.constant 0 : i32
    %37 = arith.addi %36, %c0_i32_22 : i32
    %c0_23 = arith.constant 0 : index
    %38 = arith.index_cast %37 : i32 to index
    %c0_24 = arith.constant 0 : index
    %c0_25 = arith.constant 0 : index
    %39 = vector.load %arg2[%c0_23, %38, %c0_24, %c0_25] : memref<1x36x9x8xbf16, #tpu.memory_space<vmem>>, vector<1x8x9x8xbf16>
    %40 = vector.shape_cast %39 : vector<1x8x9x8xbf16> to vector<8x9x8xbf16>
    %41 = vector.extract_strided_slice %40 {offsets = [0, 0, 0], sizes = [8, 8, 8], strides = [1, 1, 1]} : vector<8x9x8xbf16> to vector<8x8x8xbf16>
    %42 = vector.shape_cast %41 : vector<8x8x8xbf16> to vector<64x8xbf16>
    %c3 = arith.constant 3 : index
    %c0_26 = arith.constant 0 : index
    %c0_27 = arith.constant 0 : index
    %43 = vector.load %arg3[%c3, %c0_26, %c0_27] : memref<9x8x128xbf16, #tpu.memory_space<vmem>>, vector<1x8x128xbf16>
    %44 = vector.shape_cast %43 : vector<1x8x128xbf16> to vector<8x128xbf16>
    %cst_28 = arith.constant dense<0.000000e+00> : vector<64x128xf32>
    %45 = tpu.matmul %42, %44, %cst_28 {dimension_numbers = #tpu.dot_dimension_numbers<[1], [0], [0], [1], [0, 0, 1, 1], [], []>} : vector<64x8xbf16>, vector<8x128xbf16>, vector<64x128xf32> -> vector<64x128xf32>
    %46 = arith.addf %35, %45 : vector<64x128xf32>
    %c27_i32 = arith.constant 27 : i32
    %47 = arith.addi %c27_i32, %1 : i32
    %c0_i32_29 = arith.constant 0 : i32
    %48 = arith.addi %47, %c0_i32_29 : i32
    %c0_30 = arith.constant 0 : index
    %49 = arith.index_cast %48 : i32 to index
    %c0_31 = arith.constant 0 : index
    %c0_32 = arith.constant 0 : index
    %50 = vector.load %arg2[%c0_30, %49, %c0_31, %c0_32] : memref<1x36x9x8xbf16, #tpu.memory_space<vmem>>, vector<1x8x9x8xbf16>
    %51 = vector.shape_cast %50 : vector<1x8x9x8xbf16> to vector<8x9x8xbf16>
    %52 = vector.extract_strided_slice %51 {offsets = [0, 0, 0], sizes = [8, 8, 8], strides = [1, 1, 1]} : vector<8x9x8xbf16> to vector<8x8x8xbf16>
    %53 = vector.shape_cast %52 : vector<8x8x8xbf16> to vector<64x8xbf16>
    %c4 = arith.constant 4 : index
    %c0_33 = arith.constant 0 : index
    %c0_34 = arith.constant 0 : index
    %54 = vector.load %arg3[%c4, %c0_33, %c0_34] : memref<9x8x128xbf16, #tpu.memory_space<vmem>>, vector<1x8x128xbf16>
    %55 = vector.shape_cast %54 : vector<1x8x128xbf16> to vector<8x128xbf16>
    %cst_35 = arith.constant dense<0.000000e+00> : vector<64x128xf32>
    %56 = tpu.matmul %53, %55, %cst_35 {dimension_numbers = #tpu.dot_dimension_numbers<[1], [0], [0], [1], [0, 0, 1, 1], [], []>} : vector<64x8xbf16>, vector<8x128xbf16>, vector<64x128xf32> -> vector<64x128xf32>
    %57 = arith.addf %46, %56 : vector<64x128xf32>
    %c18_i32_36 = arith.constant 18 : i32
    %58 = arith.addi %c18_i32_36, %1 : i32
    %c0_i32_37 = arith.constant 0 : i32
    %59 = arith.addi %58, %c0_i32_37 : i32
    %c0_38 = arith.constant 0 : index
    %60 = arith.index_cast %59 : i32 to index
    %c0_39 = arith.constant 0 : index
    %c0_40 = arith.constant 0 : index
    %61 = vector.load %arg2[%c0_38, %60, %c0_39, %c0_40] : memref<1x36x9x8xbf16, #tpu.memory_space<vmem>>, vector<1x8x9x8xbf16>
    %62 = vector.shape_cast %61 : vector<1x8x9x8xbf16> to vector<8x9x8xbf16>
    %63 = vector.extract_strided_slice %62 {offsets = [0, 1, 0], sizes = [8, 8, 8], strides = [1, 1, 1]} : vector<8x9x8xbf16> to vector<8x8x8xbf16>
    %64 = vector.shape_cast %63 : vector<8x8x8xbf16> to vector<64x8xbf16>
    %c5 = arith.constant 5 : index
    %c0_41 = arith.constant 0 : index
    %c0_42 = arith.constant 0 : index
    %65 = vector.load %arg3[%c5, %c0_41, %c0_42] : memref<9x8x128xbf16, #tpu.memory_space<vmem>>, vector<1x8x128xbf16>
    %66 = vector.shape_cast %65 : vector<1x8x128xbf16> to vector<8x128xbf16>
    %cst_43 = arith.constant dense<0.000000e+00> : vector<64x128xf32>
    %67 = tpu.matmul %64, %66, %cst_43 {dimension_numbers = #tpu.dot_dimension_numbers<[1], [0], [0], [1], [0, 0, 1, 1], [], []>} : vector<64x8xbf16>, vector<8x128xbf16>, vector<64x128xf32> -> vector<64x128xf32>
    %68 = arith.addf %57, %67 : vector<64x128xf32>
    %c0_i32_44 = arith.constant 0 : i32
    %69 = arith.addi %c0_i32_44, %1 : i32
    %c1_i32 = arith.constant 1 : i32
    %70 = arith.addi %69, %c1_i32 : i32
    %c0_45 = arith.constant 0 : index
    %71 = arith.index_cast %70 : i32 to index
    %c0_46 = arith.constant 0 : index
    %c0_47 = arith.constant 0 : index
    %72 = vector.load %arg2[%c0_45, %71, %c0_46, %c0_47] : memref<1x36x9x8xbf16, #tpu.memory_space<vmem>>, vector<1x8x9x8xbf16>
    %73 = vector.shape_cast %72 : vector<1x8x9x8xbf16> to vector<8x9x8xbf16>
    %74 = vector.extract_strided_slice %73 {offsets = [0, 0, 0], sizes = [8, 8, 8], strides = [1, 1, 1]} : vector<8x9x8xbf16> to vector<8x8x8xbf16>
    %75 = vector.shape_cast %74 : vector<8x8x8xbf16> to vector<64x8xbf16>
    %c6 = arith.constant 6 : index
    %c0_48 = arith.constant 0 : index
    %c0_49 = arith.constant 0 : index
    %76 = vector.load %arg3[%c6, %c0_48, %c0_49] : memref<9x8x128xbf16, #tpu.memory_space<vmem>>, vector<1x8x128xbf16>
    %77 = vector.shape_cast %76 : vector<1x8x128xbf16> to vector<8x128xbf16>
    %cst_50 = arith.constant dense<0.000000e+00> : vector<64x128xf32>
    %78 = tpu.matmul %75, %77, %cst_50 {dimension_numbers = #tpu.dot_dimension_numbers<[1], [0], [0], [1], [0, 0, 1, 1], [], []>} : vector<64x8xbf16>, vector<8x128xbf16>, vector<64x128xf32> -> vector<64x128xf32>
    %79 = arith.addf %68, %78 : vector<64x128xf32>
    %c9_i32_51 = arith.constant 9 : i32
    %80 = arith.addi %c9_i32_51, %1 : i32
    %c1_i32_52 = arith.constant 1 : i32
    %81 = arith.addi %80, %c1_i32_52 : i32
    %c0_53 = arith.constant 0 : index
    %82 = arith.index_cast %81 : i32 to index
    %c0_54 = arith.constant 0 : index
    %c0_55 = arith.constant 0 : index
    %83 = vector.load %arg2[%c0_53, %82, %c0_54, %c0_55] : memref<1x36x9x8xbf16, #tpu.memory_space<vmem>>, vector<1x8x9x8xbf16>
    %84 = vector.shape_cast %83 : vector<1x8x9x8xbf16> to vector<8x9x8xbf16>
    %85 = vector.extract_strided_slice %84 {offsets = [0, 0, 0], sizes = [8, 8, 8], strides = [1, 1, 1]} : vector<8x9x8xbf16> to vector<8x8x8xbf16>
    %86 = vector.shape_cast %85 : vector<8x8x8xbf16> to vector<64x8xbf16>
    %c7 = arith.constant 7 : index
    %c0_56 = arith.constant 0 : index
    %c0_57 = arith.constant 0 : index
    %87 = vector.load %arg3[%c7, %c0_56, %c0_57] : memref<9x8x128xbf16, #tpu.memory_space<vmem>>, vector<1x8x128xbf16>
    %88 = vector.shape_cast %87 : vector<1x8x128xbf16> to vector<8x128xbf16>
    %cst_58 = arith.constant dense<0.000000e+00> : vector<64x128xf32>
    %89 = tpu.matmul %86, %88, %cst_58 {dimension_numbers = #tpu.dot_dimension_numbers<[1], [0], [0], [1], [0, 0, 1, 1], [], []>} : vector<64x8xbf16>, vector<8x128xbf16>, vector<64x128xf32> -> vector<64x128xf32>
    %90 = arith.addf %79, %89 : vector<64x128xf32>
    %c0_i32_59 = arith.constant 0 : i32
    %91 = arith.addi %c0_i32_59, %1 : i32
    %c1_i32_60 = arith.constant 1 : i32
    %92 = arith.addi %91, %c1_i32_60 : i32
    %c0_61 = arith.constant 0 : index
    %93 = arith.index_cast %92 : i32 to index
    %c0_62 = arith.constant 0 : index
    %c0_63 = arith.constant 0 : index
    %94 = vector.load %arg2[%c0_61, %93, %c0_62, %c0_63] : memref<1x36x9x8xbf16, #tpu.memory_space<vmem>>, vector<1x8x9x8xbf16>
    %95 = vector.shape_cast %94 : vector<1x8x9x8xbf16> to vector<8x9x8xbf16>
    %96 = vector.extract_strided_slice %95 {offsets = [0, 1, 0], sizes = [8, 8, 8], strides = [1, 1, 1]} : vector<8x9x8xbf16> to vector<8x8x8xbf16>
    %97 = vector.shape_cast %96 : vector<8x8x8xbf16> to vector<64x8xbf16>
    %c8 = arith.constant 8 : index
    %c0_64 = arith.constant 0 : index
    %c0_65 = arith.constant 0 : index
    %98 = vector.load %arg3[%c8, %c0_64, %c0_65] : memref<9x8x128xbf16, #tpu.memory_space<vmem>>, vector<1x8x128xbf16>
    %99 = vector.shape_cast %98 : vector<1x8x128xbf16> to vector<8x128xbf16>
    %cst_66 = arith.constant dense<0.000000e+00> : vector<64x128xf32>
    %100 = tpu.matmul %97, %99, %cst_66 {dimension_numbers = #tpu.dot_dimension_numbers<[1], [0], [0], [1], [0, 0, 1, 1], [], []>} : vector<64x8xbf16>, vector<8x128xbf16>, vector<64x128xf32> -> vector<64x128xf32>
    %101 = arith.addf %90, %100 : vector<64x128xf32>
    %102 = vector.shape_cast %101 : vector<64x128xf32> to vector<1x8x8x128xf32>
    %103 = arith.truncf %102 : vector<1x8x8x128xf32> to vector<1x8x8x128xbf16>
    %c0_67 = arith.constant 0 : index
    %c0_68 = arith.constant 0 : index
    %c0_69 = arith.constant 0 : index
    %c0_70 = arith.constant 0 : index
    %104 = vector.load %arg4[%c0_67, %c0_68, %c0_69, %c0_70] : memref<1x8x8x128xbf16, #tpu.memory_space<vmem>>, vector<1x8x8x128xbf16>
    tpu.vector_store %arg4[%c0_67, %c0_68, %c0_69, %c0_70], %103 {strides = array<i32>} : memref<1x8x8x128xbf16, #tpu.memory_space<vmem>>, vector<1x8x8x128xbf16>,
    %cst_71 = arith.constant dense<0.000000e+00> : vector<128xf32>
    %105 = vector.multi_reduction <add>, %101, %cst_71 [0] : vector<64x128xf32> to vector<128xf32>
    %106 = vector.shape_cast %105 : vector<128xf32> to vector<1x128xf32>
    %107 = vector.shape_cast %106 : vector<1x128xf32> to vector<1x1x1x128xf32>
    %c0_72 = arith.constant 0 : index
    %c0_73 = arith.constant 0 : index
    %c0_74 = arith.constant 0 : index
    %c0_75 = arith.constant 0 : index
    %108 = vector.load %arg5[%c0_72, %c0_73, %c0_74, %c0_75] : memref<1x1x1x128xf32, #tpu.memory_space<vmem>>, vector<1x1x1x128xf32>
    tpu.vector_store %arg5[%c0_72, %c0_73, %c0_74, %c0_75], %107 {strides = array<i32>} : memref<1x1x1x128xf32, #tpu.memory_space<vmem>>, vector<1x1x1x128xf32>,
    %109 = arith.mulf %101, %101 : vector<64x128xf32>
    %cst_76 = arith.constant dense<0.000000e+00> : vector<128xf32>
    %110 = vector.multi_reduction <add>, %109, %cst_76 [0] : vector<64x128xf32> to vector<128xf32>
    %111 = vector.shape_cast %110 : vector<128xf32> to vector<1x128xf32>
    %112 = vector.shape_cast %111 : vector<1x128xf32> to vector<1x1x1x128xf32>
    %c0_77 = arith.constant 0 : index
    %c0_78 = arith.constant 0 : index
    %c0_79 = arith.constant 0 : index
    %c0_80 = arith.constant 0 : index
    %113 = vector.load %arg6[%c0_77, %c0_78, %c0_79, %c0_80] : memref<1x1x1x128xf32, #tpu.memory_space<vmem>>, vector<1x1x1x128xf32>
    tpu.vector_store %arg6[%c0_77, %c0_78, %c0_79, %c0_80], %112 {strides = array<i32>} : memref<1x1x1x128xf32, #tpu.memory_space<vmem>>, vector<1x1x1x128xf32>,
    return
  }
  func.func @transform_0(%arg0: i32, %arg1: i32) -> (i32, i32, i32, i32) {
    %c0_i32 = arith.constant 0 : i32
    %c0_i32_0 = arith.constant 0 : i32
    %c0_i32_1 = arith.constant 0 : i32
    %c0_i32_2 = arith.constant 0 : i32
    return %arg0, %c0_i32, %c0_i32_0, %c0_i32_1 : i32, i32, i32, i32
  }
  func.func @transform_1(%arg0: i32, %arg1: i32) -> (i32, i32, i32) {
    %c0_i32 = arith.constant 0 : i32
    %c0_i32_0 = arith.constant 0 : i32
    %c0_i32_1 = arith.constant 0 : i32
    %c0_i32_2 = arith.constant 0 : i32
    return %c0_i32, %c0_i32_0, %c0_i32_1 : i32, i32, i32
  }
  func.func @transform_2(%arg0: i32, %arg1: i32) -> (i32, i32, i32, i32) {
    %c0_i32 = arith.constant 0 : i32
    %c0_i32_0 = arith.constant 0 : i32
    %c0_i32_1 = arith.constant 0 : i32
    return %arg0, %arg1, %c0_i32, %c0_i32_0 : i32, i32, i32, i32
  }
  func.func @transform_3(%arg0: i32, %arg1: i32) -> (i32, i32, i32, i32) {
    %c0_i32 = arith.constant 0 : i32
    %c0_i32_0 = arith.constant 0 : i32
    %c0_i32_1 = arith.constant 0 : i32
    return %arg0, %arg1, %c0_i32, %c0_i32_0 : i32, i32, i32, i32
  }
  func.func @transform_4(%arg0: i32, %arg1: i32) -> (i32, i32, i32, i32) {
    %c0_i32 = arith.constant 0 : i32
    %c0_i32_0 = arith.constant 0 : i32
    %c0_i32_1 = arith.constant 0 : i32
    return %arg0, %arg1, %c0_i32, %c0_i32_0 : i32, i32, i32, i32
  }
}

</mosaic_0001>

<bundles_post_ra>
// kernel: tpu_custom_call.1
= control target key start
LH: loop header
LB: loop body
LE: loop exit
PB: predicated region body
PF: predicated region fallthrough
CT: control target
= control target key end

     0   :  { %10 = vsyncpa [#allocation3], 0  ;;  %s2961_s0 = inlined_call_operand.vmem [shape: bf16[2,36,9,8], index: 0, kind: input, shape index: {}]   ;;  %s2962_s1 = inlined_call_operand.vmem [shape: bf16[9,8,128], index: 1, kind: input, shape index: {}]   ;;  %s2963_s2 = inlined_call_operand.hbm [shape: bf16[2,8,8,128], index: 2, kind: output, shape index: {0}]   ;;  %s2964_s3 = inlined_call_operand.hbm [shape: f32[2,1,1,128], index: 3, kind: output, shape index: {1}]   ;;  %s2965_s4 = inlined_call_operand.hbm [shape: f32[2,1,1,128], index: 4, kind: output, shape index: {2}]  }
   0x1   :  { %12 = vsyncpa [#allocation3 + $0x1], 0 }
   0x2   :  { %13 = vsyncpa [#allocation5], 0 }
   0x3   :  { %15 = vsyncpa [#allocation5 + $0x1], 0  ;;  %s2449_s15 = smov 0   ;;  %s2451_s16 = smov 0  }
   0x4   :  { %s2453_s17 = smov 0   ;;  %s2455_s18 = smov 0  }
   0x5   :  { %s2457_s19 = smov 0   ;;  %s2459_s20 = smov 0  }
   0x6 LB: > { %s1872_s21 = sadd.s32 4294967295, %s2417_s20   ;;  %s2966_s22 = sadd.s32 4294967294, %s2417_s20   ;;  %s2417_s20 = sphi %s2459_s20, %s21_s20   ;;  %s2413_s19 = sphi %s2457_s19, %s2976_s19   ;;  %s2409_s18 = sphi %s2455_s18, %s2975_s18   ;;  %s2405_s17 = sphi %s2453_s17, %s2974_s17   ;;  %s2401_s16 = sphi %s2451_s16, %s2973_s16   ;;  %s2397_s15 = sphi %s2449_s15, %s2972_s15  }
   0x7   : > { %s33_s23 = sadd.s32 1, %s2413_s19  ;;  %s89_s24 = sadd.s32 1, %s2405_s17 }
   0x8   : > { %p35_p0 = scmp.ge.s32.totalorder %s33_s23, 2  ;;  %p99_p1 = scmp.ne.s32.totalorder %s2405_s17, %s2401_s16 }
   0x9   : > { %p100_p2 = scmp.eq.s32.totalorder %s1872_s21, 1  ;;  %p105_p3 = scmp.ne.s32.totalorder %s2401_s16, %s2397_s15 }
   0xa   : > { %s2978_s23 = smov (%p35_p0, %s33_s23), 0  ;;  %p106_p5 = scmp.eq.s32.totalorder %s2966_s22, 1 }
   0xb   : > { %p2491_p4 = por %p100_p2, %p99_p1  ;;  %s84_s26 = ssub.s32 %s2413_s19, %s2978_s23 }
   0xc   : > { %p1876_p6 = scmp.ge.s32.totalorder %s2417_s20, 1  ;;  %p87_p7 = scmp.eq.s32.totalorder %s84_s26, 0 }
   0xd   : > { %p2500_p8 = por %p106_p5, %p105_p3  ;;  %p191_p9 = scmp.lt.s32.totalorder %s2417_s20, 3 }
   0xe   : > { %s2506_s28 = scalar_select %p87_p7, %s2405_s17, %s89_s24  }
   0xf   : > { %p192_p10 = pnand %p1876_p6, %p191_p9 }
  0x10   : > { %p225_p11 = scmp.lt.s32.totalorder (!%p192_p10), %s2409_s18, 1  ;;  %s2022_s26 = sshll.u32 (!%p192_p10), %s2409_s18, 9 }
  0x11   : > { %195 = sbr.rel (%p192_p10) target bundleno = 366 (0x16e), region = 28  ;;  %s2839_s5 = scalar_lea.hbm (!%p192_p10), %s2963_s2, %s2022_s26 }
  0x12   : > { %s2419_s8 = smov (!%p192_p10), [#allocation2]  }
  0x16   : > { %v1887_v0 = vld [vmem:[%s2962_s1 + $0x4] sm:$0xf]  ;;  %vm300_vm0 = vcmask 1043456   ;;  %v252_v2 = vld [vmem:[%s2962_s1] sm:$0xf]  ;;  %s226_s9 = scalar_select %p225_p11, %s2409_s18, 1 }
  0x17   : > { %2184 = vmatprep.subr.msk.bf16.mxu1 %vm300_vm0, %v1887_v0  ;;  %2183 = vmatprep.subr.msk.bf16.mxu0 %vm300_vm0, %v1887_v0  ;;  %v302_v1 = vsel %vm300_vm0, %v1887_v0, 0  ;;  %v1904_v3 = vld [vmem:[%s2962_s1 + $0x8] sm:$0xf]  ;;  %v1929_v4 = vld [vmem:[%s2962_s1 + $0xc] sm:$0xf]  ;;  %vm287_vm1 = vcmask 64512  }
  0x18   : > { %2182 = vmatpush3.bf16.msra.mxu1 %v302_v1  ;;  %2092 = vmatpush3.bf16.msra.mxu0 %v302_v1  ;;  %s2193_s12 = smul.u32 288, %s226_s9  ;;  %v402_v5 = vsel %vm300_vm0, %v252_v2, 0  ;;  %v1946_v6 = vld [vmem:[%s2962_s1 + $0x10] sm:$0xf]  ;;  %v2534_v7 = vld [vmem:[%s2962_s1 + $0x14] sm:$0xf] }
  0x19   : > { %2185 = vmatprep.subr.msk.bf16.mxu1 %vm300_vm0, %v252_v2  ;;  %2186 = vmatprep.subr.msk.bf16.mxu0 %vm300_vm0, %v1904_v3  ;;  %v611_v8 = vsel %vm300_vm0, %v1904_v3, 0  ;;  %v2538_v9 = vsel %vm300_vm0, %v1929_v4, 0  ;;  %v2543_v10 = vld [vmem:[%s2962_s1 + $0x18] sm:$0xf]  ;;  %v2548_v11 = vld [vmem:[%s2962_s1 + $0x1c] sm:$0xf] }
  0x1a   : > { %s2553_s9 = scalar_lea.vmem %s2961_s0, %s2193_s12  ;;  %vm469_vm2 = vsmask.f32 3328  ;;  %vm470_vm3 = vsmask.f32 7440  ;;  %v2556_v12 = vsel %vm300_vm0, %v1946_v6, 0  ;;  %v2560_v13 = vsel %vm300_vm0, %v2534_v7, 0 }
  0x1b   : > { %v2564_v14 = vsel %vm300_vm0, %v2543_v10, 0  ;;  %v2568_v15 = vsel %vm300_vm0, %v2548_v11, 0  ;;  %v2261_v16 = vld [vmem:[%s2553_s9 + $0x48] ss:$8 sps:$4 sm:$0xff]   ;;  %v2263_v18 = vld [vmem:[%s2553_s9 + $0x58] ss:$8 sps:$4 sm:$0xff]   ;;  %vm2591_vm4 = vmor %vm469_vm2, %vm470_vm3 }
  0x1c   : > { %v2262_v17 = vld [vmem:[%s2553_s9 + $0x68] ss:$8 sps:$4 sm:$0xff]   ;;  %2093 = vmatprep.mubr.msk.bf16.mxu0 %vm287_vm1, %v2261_v16  ;;  %v2264_v19 = vld [vmem:[%s2553_s9 + $0x78] ss:$8 sps:$4 sm:$0xff]   ;;  %v237_v32 = vld [vmem:[%s2553_s9 + $0x4] sm:$0x1] }
  0x1d   : > { %2097 = vmatprep.mubr.msk.bf16.mxu1 %vm287_vm1, %v2262_v17  ;;  %2094 = vmatmul.mubr.msk.bf16.vlgmr.msra.gmra.mxu0 %vm287_vm1, %v2263_v18  ;;  %v236_v20 = vld [vmem:[%s2553_s9] sm:$0xf]  ;;  %v238_v21 = vld [vmem:[%s2553_s9 + $0x8] sm:$0xf]  ;;  %v240_v22 = vld [vmem:[%s2553_s9 + $0x10] sm:$0xf] }
  0x1e   : > { %2098 = vmatmul.mubr.msk.bf16.vlgmr.msra.gmra.mxu1 %vm287_vm1, %v2264_v19  ;;  %2112 = vmatpush3.bf16.msra.mxu0 %v611_v8  ;;  %v1896_v23 = vcombine.low %v236_v20, %v238_v21  ;;  %v473_v24 = vshrl.u32 %v236_v20, 16  ;;  %v476_v25 = vshll.u32 %v236_v20, 16  ;;  %v487_v26 = vshrl.u32 %v238_v21, 16  ;;  %v242_v27 = vld [vmem:[%s2553_s9 + $0x18] sm:$0xf]  ;;  %s2825_s12 = sand.u32 1, %s2401_s16  }
  0x1f   : > { %2102 = vmatpush3.bf16.msra.mxu1 %v402_v5  ;;  %v490_v28 = vshll.u32 %v238_v21, 16  ;;  %v1897_v29 = vcombine.low %v240_v22, %v242_v27  ;;  %v501_v30 = vshrl.u32 %v240_v22, 16  ;;  %v504_v31 = vshll.u32 %v240_v22, 16  ;;  %2188 = vmatprep.subr.msk.bf16.mxu0 %vm300_vm0, %v1946_v6  ;;  %v239_v37 = vld [vmem:[%s2553_s9 + $0xc] sm:$0x1]  ;;  %s1877_s13 = sshll.u32 %s2825_s12, 5 }
  0x20   : > { %2103 = vmatprep.mubr.msk.bf16.mxu1 %vm287_vm1, %v1896_v23  ;;  %v475_v33 = vrot.slane %v473_v24, 4  ;;  %v478_v34 = vrot.slane %v476_v25, 5  ;;  %v489_v35 = vrot.slane %v487_v26, 4  ;;  %2187 = vmatprep.subr.msk.bf16.mxu1 %vm300_vm0, %v1929_v4  ;;  %v515_v36 = vshrl.u32 %v242_v27, 16  ;;  %v241_v42 = vld [vmem:[%s2553_s9 + $0x14] sm:$0x1] }
  0x21   : > { %v492_v38 = vrot.slane %v490_v28, 5  ;;  %v503_v39 = vrot.slane %v501_v30, 4  ;;  %v506_v40 = vrot.slane %v504_v31, 5  ;;  %v518_v41 = vshll.u32 %v242_v27, 16  ;;  %v243_v47 = vld [vmem:[%s2553_s9 + $0x1c] sm:$0x1] }
  0x22   : > { %v517_v43 = vrot.slane %v515_v36, 4  ;;  %v479_v44 = vor.u32 %v478_v34, %v475_v33  ;;  %v482_v45 = vshll.u32 %v237_v32, 16  ;;  %v496_v46 = vshll.u32 %v239_v37, 16  ;;  %v244_v53 = vld [vmem:[%s2553_s9 + $0x20] sm:$0xf]  ;;  %s2829_s14 = scalar_lea.vmem [#allocation2], %s1877_s13 }
  0x23   : > { %v520_v48 = vrot.slane %v518_v41, 5  ;;  %v493_v50 = vor.u32 %v492_v38, %v489_v35  ;;  %v507_v51 = vor.u32 %v506_v40, %v503_v39  ;;  %v510_v52 = vshll.u32 %v241_v42, 16  ;;  %v246_v62 = vld [vmem:[%s2553_s9 + $0x28] sm:$0xf]  ;;  %v248_v3 = vld [vmem:[%s2553_s9 + $0x30] sm:$0xf] }
  0x24   : > { %v480_v54 = vrot.slane %v479_v44, 4  ;;  %v484_v55 = vrot.slane %v482_v45, 5  ;;  %v498_v56 = vrot.slane %v496_v46, 5  ;;  %v524_v57 = vshll.u32 %v243_v47, 16  ;;  %v250_v16 = vld [vmem:[%s2553_s9 + $0x38] sm:$0xf] }
  0x25   : > { %v494_v58 = vrot.slane %v493_v50, 4  ;;  %v508_v59 = vrot.slane %v507_v51, 4  ;;  %v512_v60 = vrot.slane %v510_v52, 5  ;;  %v521_v61 = vor.u32 %v520_v48, %v517_v43  ;;  %v245_v21 = vld [vmem:[%s2553_s9 + $0x24] sm:$0x1]  ;;  %s1694_s24 = sshll.u32 %s2829_s14, 4  ;;  %s2841_s24 = int_to_ptr.vmem [resolvable:$true] %s1694_s24 }
  0x26   : > { %2104 = vmatmul.mubr.msk.bf16.vlgmr.msra.gmra.mxu1 %vm287_vm1, %v1897_v29  ;;  %v485_v63 = vsel %vm2591_vm4, %v480_v54, %v484_v55  ;;  %v526_v0 = vrot.slane %v524_v57, 5  ;;  %v1898_v1 = vcombine.low %v244_v53, %v246_v62  ;;  %v529_v2 = vshrl.u32 %v244_v53, 16  ;;  %v247_v25 = vld [vmem:[%s2553_s9 + $0x2c] sm:$0x1]  ;;  %v249_v26 = vld [vmem:[%s2553_s9 + $0x34] sm:$0x1] }
  0x27   : > { %v499_v4 = vsel %vm2591_vm4, %v494_v58, %v498_v56  ;;  %2122 = vmatpush3.bf16.msra.mxu1 %v2538_v9  ;;  %v513_v5 = vsel %vm2591_vm4, %v508_v59, %v512_v60  ;;  %v522_v6 = vrot.slane %v521_v61, 4  ;;  %v532_v8 = vshll.u32 %v244_v53, 16  ;;  %v251_v31 = vld [vmem:[%s2553_s9 + $0x3c] sm:$0x1]  ;;  %v1913_v32 = vld [vmem:[%s2553_s9 + $0x90] sm:$0xf] }
  0x28   : > { %v1905_v17 = vcombine.low %v485_v63, %v499_v4  ;;  %2107 = vmatprep.mubr.msk.bf16.mxu1 %vm287_vm1, %v1898_v1  ;;  %v531_v18 = vrot.slane %v529_v2, 4  ;;  %v543_v19 = vshrl.u32 %v246_v62, 16  ;;  %v546_v20 = vshll.u32 %v246_v62, 16  ;;  %2189 = vmatprep.subr.msk.bf16.mxu1 %vm300_vm0, %v2534_v7  ;;  %v1915_v33 = vld [vmem:[%s2553_s9 + $0x98] sm:$0xf]  ;;  %s1671_s6 = scalar_lea.sflag [#allocation3], %s2825_s12 }
  0x29   : > { %v527_v9 = vsel %vm2591_vm4, %v522_v6, %v526_v0  ;;  %v534_v22 = vrot.slane %v532_v8, 5  ;;  %v1899_v23 = vcombine.low %v248_v3, %v250_v16  ;;  %v557_v24 = vshrl.u32 %v248_v3, 16  ;;  %v1917_v53 = vld [vmem:[%s2553_s9 + $0xa0] sm:$0xf]  ;;  %v1919_v58 = vld [vmem:[%s2553_s9 + $0xa8] sm:$0xf] }
  0x2a   : > { %2113 = vmatprep.mubr.msk.bf16.mxu0 %vm287_vm1, %v1905_v17  ;;  %v1906_v27 = vcombine.low %v513_v5, %v527_v9  ;;  %v545_v28 = vrot.slane %v543_v19, 4  ;;  %v548_v29 = vrot.slane %v546_v20, 5  ;;  %v560_v30 = vshll.u32 %v248_v3, 16  ;;  %v1921_v59 = vld [vmem:[%s2553_s9 + $0xb0] sm:$0xf]  ;;  %s2285_s7 = scalar_lea.vmem %s2841_s24, 512 }
  0x2b   : > { %v559_v34 = vrot.slane %v557_v24, 4  ;;  %v571_v35 = vshrl.u32 %v250_v16, 16  ;;  %v574_v7 = vshll.u32 %v250_v16, 16  ;;  %v535_v36 = vor.u32 %v534_v22, %v531_v18  ;;  %v2271_v63 = vld [vmem:[%s2553_s9 + $0xd8] ss:$8 sps:$4 sm:$0xff]   ;;  %p2286_p12 = scmp.ne.s32.totalorder %s2841_s24, %s2285_s7 }
  0x2c   : > { %2114 = vmatmul.mubr.msk.bf16.vlgmr.msra.gmra.mxu0 %vm287_vm1, %v1906_v27  ;;  %v562_v37 = vrot.slane %v560_v30, 5  ;;  %v538_v38 = vshll.u32 %v245_v21, 16  ;;  %v549_v39 = vor.u32 %v548_v29, %v545_v28  ;;  %v552_v40 = vshll.u32 %v247_v25, 16  ;;  %v1923_v0 = vld [vmem:[%s2553_s9 + $0xb8] sm:$0xf] }
  0x2d   : > { %2132 = vmatpush3.bf16.msra.mxu0 %v2556_v12  ;;  %v573_v41 = vrot.slane %v571_v35, 4  ;;  %v576_v42 = vrot.slane %v574_v7, 5  ;;  %v536_v43 = vrot.slane %v535_v36, 4  ;;  %v566_v44 = vshll.u32 %v249_v26, 16  ;;  %v2637_v5 = vld [vmem:[%s2553_s9 + $0xc0] sm:$0xf]  ;;  %p2287_p13 = pnand %p2286_p12, %p2491_p4 }
  0x2e   : > { %2108 = vmatmul.mubr.msk.bf16.gmra.mxu1 %vm287_vm1, %v1899_v23  ;;  %v540_v45 = vrot.slane %v538_v38, 5  ;;  %v550_v46 = vrot.slane %v549_v39, 4  ;;  %v554_v47 = vrot.slane %v552_v40, 5  ;;  %v563_v48 = vor.u32 %v562_v37, %v559_v34  ;;  %2190 = vmatprep.subr.msk.bf16.mxu0 %vm300_vm0, %v2543_v10  ;;  %v1927_v9 = vld [vmem:[%s2553_s9 + $0xc8] sm:$0xf] }
  0x2f   : > { %v568_v50 = vrot.slane %v566_v44, 5  ;;  %v577_v51 = vor.u32 %v576_v42, %v573_v41  ;;  %v580_v12 = vshll.u32 %v251_v31, 16  ;;  %v1930_v52 = vcombine.low %v1913_v32, %v1915_v33  ;;  %v2272_v34 = vld [vmem:[%s2553_s9 + $0xe8] ss:$8 sps:$4 sm:$0xff]   ;;  %v1914_v38 = vld [vmem:[%s2553_s9 + $0x94] sm:$0x1]  ;;  %p2288_p0 = pneg %p2287_p13 }
  0x30   : > { %v541_v54 = vsel %vm2591_vm4, %v536_v43, %v540_v45  ;;  %v555_v55 = vsel %vm2591_vm4, %v550_v46, %v554_v47  ;;  %v564_v56 = vrot.slane %v563_v48, 4  ;;  %v939_v57 = vshrl.u32 %v1913_v32, 16  ;;  %v2275_v42 = vld [vmem:[%s2553_s9 + $0xf8] ss:$8 sps:$4 sm:$0xff]   ;;  %v1916_v43 = vld [vmem:[%s2553_s9 + $0x9c] sm:$0x1] }
  0x31   : > { %v1907_v60 = vcombine.low %v541_v54, %v555_v55  ;;  %v578_v10 = vrot.slane %v577_v51, 4  ;;  %v582_v61 = vrot.slane %v580_v12, 5  ;;  %2123 = vmatprep.mubr.msk.bf16.mxu1 %vm287_vm1, %v1930_v52  ;;  %v942_v62 = vshll.u32 %v1913_v32, 16  ;;  %v1918_v48 = vld [vmem:[%s2553_s9 + $0xa4] sm:$0x1] }
  0x32   : > { %v569_v1 = vsel %vm2591_vm4, %v564_v56, %v568_v50  ;;  %v941_v2 = vrot.slane %v939_v57, 4  ;;  %v953_v3 = vshrl.u32 %v1915_v33, 16  ;;  %v956_v4 = vshll.u32 %v1915_v33, 16  ;;  %v1920_v50 = vld [vmem:[%s2553_s9 + $0xac] sm:$0x1] }
  0x33   : > { %2117 = vmatprep.mubr.msk.bf16.mxu0 %vm287_vm1, %v1907_v60  ;;  %v583_v6 = vsel %vm2591_vm4, %v578_v10, %v582_v61  ;;  %v944_v8 = vrot.slane %v942_v62, 5  ;;  %v1931_v16 = vcombine.low %v1917_v53, %v1919_v58  ;;  %v967_v17 = vshrl.u32 %v1917_v53, 16  ;;  %v2006_v62 = vld [vmem:[%s2962_s1 + $0x20] sm:$0xf] }
  0x34   : > { %v1908_v18 = vcombine.low %v569_v1, %v583_v6  ;;  %v955_v19 = vrot.slane %v953_v3, 4  ;;  %v958_v20 = vrot.slane %v956_v4, 5  ;;  %v970_v21 = vshll.u32 %v1917_v53, 16  ;;  %v2676_v53 = vld [vmem:[%s2553_s9 + $0x8] sm:$0xf] }
  0x35   : > { %v969_v22 = vrot.slane %v967_v17, 4  ;;  %v981_v23 = vshrl.u32 %v1919_v58, 16  ;;  %v984_v24 = vshll.u32 %v1919_v58, 16  ;;  %v1932_v25 = vcombine.low %v1921_v59, %v1923_v0  ;;  %v1966_v58 = vld [vmem:[%s2553_s9 + $0x10] sm:$0xf] }
  0x36   : > { %2118 = vmatmul.mubr.msk.bf16.gmra.mxu0 %vm287_vm1, %v1908_v18  ;;  %2124 = vmatmul.mubr.msk.bf16.vlgmr.msra.gmra.mxu1 %vm287_vm1, %v1931_v16  ;;  %v972_v26 = vrot.slane %v970_v21, 5  ;;  %v995_v27 = vshrl.u32 %v1921_v59, 16  ;;  %v998_v28 = vshll.u32 %v1921_v59, 16  ;;  %v1009_v29 = vshrl.u32 %v1923_v0, 16  ;;  %v2689_v3 = vld [vmem:[%s2553_s9 + $0x18] sm:$0xf] }
  0x37   : > { %v983_v30 = vrot.slane %v981_v23, 4  ;;  %v986_v31 = vrot.slane %v984_v24, 5  ;;  %2133 = vmatprep.mubr.msk.bf16.mxu0 %vm287_vm1, %v2271_v63  ;;  %2142 = vmatpush3.bf16.msra.mxu1 %v2560_v13  ;;  %v1012_v32 = vshll.u32 %v1923_v0, 16  ;;  %v1933_v33 = vcombine.low %v2637_v5, %v1927_v9  ;;  %v2692_v4 = vld [vmem:[%s2553_s9 + $0x20] sm:$0xf] }
  0x38   : > { %2127 = vmatprep.mubr.msk.bf16.mxu1 %vm287_vm1, %v1932_v25  ;;  %v2650_v35 = vrot.slane %v995_v27, 4  ;;  %v2652_v7 = vrot.slane %v998_v28, 5  ;;  %v2654_v36 = vrot.slane %v1009_v29, 4  ;;  %v1023_v37 = vshrl.u32 %v2637_v5, 16  ;;  %2191 = vmatprep.subr.msk.bf16.mxu1 %vm300_vm0, %v2548_v11  ;;  %v2276_v17 = vld [vmem:[%s2553_s9 + $0x108] ss:$8 sps:$4 sm:$0xff]  }
  0x39   : > { %v2660_v13 = vrot.slane %v1012_v32, 5  ;;  %v1026_v39 = vshll.u32 %v2637_v5, 16  ;;  %v1037_v40 = vshrl.u32 %v1927_v9, 16  ;;  %v1040_v41 = vshll.u32 %v1927_v9, 16  ;;  %v1922_v24 = vld [vmem:[%s2553_s9 + $0xb4] sm:$0x1] }
  0x3a   : > { %v2665_v44 = vrot.slane %v1023_v37, 4  ;;  %v945_v45 = vor.u32 %v944_v8, %v941_v2  ;;  %v948_v46 = vshll.u32 %v1914_v38, 16  ;;  %v959_v47 = vor.u32 %v958_v20, %v955_v19  ;;  %v1924_v25 = vld [vmem:[%s2553_s9 + $0xbc] sm:$0x1]  ;;  %v1972_v38 = vld [vmem:[%s2553_s9 + $0x28] sm:$0xf] }
  0x3b   : > { %v2669_v51 = vrot.slane %v1026_v39, 5  ;;  %v2671_v11 = vrot.slane %v1037_v40, 4  ;;  %v2673_v12 = vrot.slane %v1040_v41, 5  ;;  %v962_v52 = vshll.u32 %v1916_v43, 16  ;;  %v1974_v43 = vld [vmem:[%s2553_s9 + $0x30] sm:$0xf] }
  0x3c   : > { %v946_v54 = vrot.slane %v945_v45, 4  ;;  %v950_v55 = vrot.slane %v948_v46, 5  ;;  %v960_v56 = vrot.slane %v959_v47, 4  ;;  %v973_v57 = vor.u32 %v972_v26, %v969_v22 }
  0x3d   : > { %v964_v59 = vrot.slane %v962_v52, 5  ;;  %v976_v60 = vshll.u32 %v1918_v48, 16  ;;  %v987_v10 = vor.u32 %v986_v31, %v983_v30  ;;  %v990_v61 = vshll.u32 %v1920_v50, 16  ;;  %v1926_v30 = vld [vmem:[%s2553_s9 + $0xc4] sm:$0x1] }
  0x3e   : > { %2134 = vmatmul.mubr.msk.bf16.vlgmr.msra.gmra.mxu0 %vm287_vm1, %v2272_v34  ;;  %2128 = vmatmul.mubr.msk.bf16.gmra.mxu1 %vm287_vm1, %v1933_v33  ;;  %v951_v63 = vsel %vm2591_vm4, %v946_v54, %v950_v55  ;;  %v974_v0 = vrot.slane %v973_v57, 4  ;;  %v1981_v1 = vcombine.low %v2676_v53, %v1966_v58  ;;  %v1405_v2 = vshrl.u32 %v2676_v53, 16  ;;  %v1928_v31 = vld [vmem:[%s2553_s9 + $0xcc] sm:$0x1] }
  0x3f   : > { %2152 = vmatpush3.bf16.msra.mxu0 %v2564_v14  ;;  %2137 = vmatprep.mubr.msk.bf16.mxu0 %vm287_vm1, %v2275_v42  ;;  %v965_v5 = vsel %vm2591_vm4, %v960_v56, %v964_v59  ;;  %v978_v6 = vrot.slane %v976_v60, 5  ;;  %v988_v8 = vrot.slane %v987_v10, 4  ;;  %v992_v16 = vrot.slane %v990_v61, 5  ;;  %v2753_v10 = vld [vmem:[%s2553_s9 + $0x40] sm:$0xf] }
  0x40   : > { %v1956_v18 = vcombine.low %v951_v63, %v965_v5  ;;  %v2699_v19 = vrot.slane %v1405_v2, 4  ;;  %v1408_v20 = vshll.u32 %v2676_v53, 16  ;;  %v1419_v21 = vshrl.u32 %v1966_v58, 16  ;;  %2192 = vmatprep.subr.msk.bf16.mxu0 %vm300_vm0, %v2006_v62  ;;  %v2281_v63 = vld [vmem:[%s2553_s9 + $0x50] ss:$8 sps:$4 sm:$0xff]  }
  0x41   : > { %v979_v14 = vsel %vm2591_vm4, %v974_v0, %v978_v6  ;;  %v993_v9 = vsel %vm2591_vm4, %v988_v8, %v992_v16  ;;  %v1422_v22 = vshll.u32 %v1966_v58, 16  ;;  %v1982_v23 = vcombine.low %v2689_v3, %v2692_v4  ;;  %v1965_v6 = vld [vmem:[%s2553_s9 + $0xc] sm:$0x1]  ;;  %v1967_v8 = vld [vmem:[%s2553_s9 + $0x14] sm:$0x1] }
  0x42   : > { %2143 = vmatprep.mubr.msk.bf16.mxu1 %vm287_vm1, %v1956_v18  ;;  %v1957_v26 = vcombine.low %v979_v14, %v993_v9  ;;  %v2712_v27 = vrot.slane %v1408_v20, 5  ;;  %v2714_v28 = vrot.slane %v1419_v21, 4  ;;  %v1433_v29 = vshrl.u32 %v2689_v3, 16  ;;  %v1969_v21 = vld [vmem:[%s2553_s9 + $0x1c] sm:$0x1] }
  0x43   : > { %v2719_v32 = vrot.slane %v1422_v22, 5  ;;  %v1436_v33 = vshll.u32 %v2689_v3, 16  ;;  %v1447_v34 = vshrl.u32 %v2692_v4, 16  ;;  %v1450_v37 = vshll.u32 %v2692_v4, 16 }
  0x44   : > { %v2725_v39 = vrot.slane %v1433_v29, 4  ;;  %v1543_v40 = vsel %vm300_vm0, %v2006_v62, 0  ;;  %v1001_v41 = vor.u32 %v2652_v7, %v2650_v35  ;;  %v1004_v42 = vshll.u32 %v1922_v24, 16 }
  0x45   : > { %v2731_v45 = vrot.slane %v1436_v33, 5  ;;  %v2733_v46 = vrot.slane %v1447_v34, 4  ;;  %v2735_v47 = vrot.slane %v1450_v37, 5  ;;  %v1015_v48 = vor.u32 %v2660_v13, %v2654_v36 }
  0x46   : > { %2138 = vmatmul.mubr.msk.bf16.gmra.mxu0 %vm287_vm1, %v2276_v17  ;;  %2144 = vmatmul.mubr.msk.bf16.vlgmr.msra.gmra.mxu1 %vm287_vm1, %v1957_v26  ;;  %v1002_v50 = vrot.slane %v1001_v41, 4  ;;  %v1006_v52 = vrot.slane %v1004_v42, 5  ;;  %v1018_v53 = vshll.u32 %v1924_v25, 16  ;;  %v1029_v35 = vor.u32 %v2669_v51, %v2665_v44  ;;  %v2750_v44 = vld [vmem:[%s2553_s9 + $0x38] sm:$0xf] }
  0x47   : > { %2153 = vmatprep.mubr.msk.bf16.mxu0 %vm287_vm1, %v1981_v1  ;;  %2162 = vmatpush3.bf16.msra.mxu1 %v2568_v15  ;;  %v1016_v7 = vrot.slane %v1015_v48, 4  ;;  %v1032_v54 = vshll.u32 %v1926_v30, 16  ;;  %v1043_v36 = vor.u32 %v2673_v12, %v2671_v11  ;;  %v1046_v13 = vshll.u32 %v1928_v31, 16  ;;  %v1971_v31 = vld [vmem:[%s2553_s9 + $0x24] sm:$0x1] }
  0x48   : > { %v1007_v55 = vsel %vm2591_vm4, %v1002_v50, %v1006_v52  ;;  %v1020_v56 = vrot.slane %v1018_v53, 5  ;;  %v1030_v57 = vrot.slane %v1029_v35, 4  ;;  %v1983_v58 = vcombine.low %v1972_v38, %v1974_v43  ;;  %v1973_v41 = vld [vmem:[%s2553_s9 + $0x2c] sm:$0x1]  ;;  %v2282_v42 = vld [vmem:[%s2553_s9 + $0x60] ss:$8 sps:$4 sm:$0xff]  }
  0x49   : > { %v1034_v51 = vrot.slane %v1032_v54, 5  ;;  %v1044_v59 = vrot.slane %v1043_v36, 4  ;;  %v1048_v15 = vrot.slane %v1046_v13, 5  ;;  %v1461_v60 = vshrl.u32 %v1972_v38, 16  ;;  %v1975_v50 = vld [vmem:[%s2553_s9 + $0x34] sm:$0x1] }
  0x4a   : > { %v1021_v11 = vsel %vm2591_vm4, %v1016_v7, %v1020_v56  ;;  %v1464_v12 = vshll.u32 %v1972_v38, 16  ;;  %v1475_v61 = vshrl.u32 %v1974_v43, 16  ;;  %v1478_v62 = vshll.u32 %v1974_v43, 16  ;;  %v2283_v54 = vld [vmem:[%s2553_s9 + $0x70] ss:$8 sps:$4 sm:$0xff]  }
  0x4b   : > { %v1958_v0 = vcombine.low %v1007_v55, %v1021_v11  ;;  %v1035_v1 = vsel %vm2591_vm4, %v1030_v57, %v1034_v51  ;;  %v1049_v2 = vsel %vm2591_vm4, %v1044_v59, %v1048_v15  ;;  %v1463_v5 = vrot.slane %v1461_v60, 4  ;;  %v1977_v55 = vld [vmem:[%s2553_s9 + $0x3c] sm:$0x1] }
  0x4c   : > { %v1959_v16 = vcombine.low %v1035_v1, %v1049_v2  ;;  %v1466_v17 = vrot.slane %v1464_v12, 5  ;;  %v1477_v18 = vrot.slane %v1475_v61, 4  ;;  %v1480_v20 = vrot.slane %v1478_v62, 5 }
  0x4d   : > { %2147 = vmatprep.mubr.msk.bf16.mxu1 %vm287_vm1, %v1958_v0  ;;  %v1984_v14 = vcombine.low %v2750_v44, %v2753_v10  ;;  %v1489_v9 = vshrl.u32 %v2750_v44, 16  ;;  %v1492_v22 = vshll.u32 %v2750_v44, 16  ;;  %v1503_v24 = vshrl.u32 %v2753_v10, 16  ;;  %v2284_v0 = vld [vmem:[%s2553_s9 + $0x80] ss:$8 sps:$4 sm:$0xff]  }
  0x4e   : > { %2154 = vmatmul.mubr.msk.bf16.vlgmr.msra.gmra.mxu0 %vm287_vm1, %v1982_v23  ;;  %2148 = vmatmul.mubr.msk.bf16.gmra.mxu1 %vm287_vm1, %v1959_v16  ;;  %v1506_v25 = vshll.u32 %v2753_v10, 16  ;;  %v1411_v26 = vor.u32 %v2712_v27, %v2699_v19  ;;  %v1414_v29 = vshll.u32 %v1965_v6, 16  ;;  %v1425_v30 = vor.u32 %v2719_v32, %v2714_v28 }
  0x4f   : > { %2172 = vmatpush3.bf16.msra.mxu0 %v1543_v40  ;;  %2157 = vmatprep.mubr.msk.bf16.mxu0 %vm287_vm1, %v1983_v58  ;;  %v1491_v3 = vrot.slane %v1489_v9, 4  ;;  %v1494_v4 = vrot.slane %v1492_v22, 5  ;;  %v1505_v23 = vrot.slane %v1503_v24, 4  ;;  %v1428_v33 = vshll.u32 %v1967_v8, 16  ;;  %v1979_v58 = vld [vmem:[%s2553_s9 + $0x44] sm:$0x1] }
  0x50   : > { %v1508_v34 = vrot.slane %v1506_v25, 5  ;;  %2163 = vmatprep.mubr.msk.bf16.mxu1 %vm287_vm1, %v2281_v63  ;;  %v1412_v37 = vrot.slane %v1411_v26, 4  ;;  %v1416_v19 = vrot.slane %v1414_v29, 5  ;;  %v1426_v27 = vrot.slane %v1425_v30, 4  ;;  %s2289_s9 = sshll.u32 %s2419_s8, 4  ;;  %s2290_s9 = int_to_ptr.vmem [resolvable:$false] %s2289_s9 }
  0x51   : > { %v1430_v38 = vrot.slane %v1428_v33, 5  ;;  %v1439_v28 = vor.u32 %v2731_v45, %v2725_v39  ;;  %v1442_v32 = vshll.u32 %v1969_v21, 16  ;;  %v1453_v40 = vor.u32 %v2735_v47, %v2733_v46  ;;  %s2291_s10 = scalar_lea.vmem %s2290_s9, 1024  ;;  %p2292_p1 = scmp.lt.s32.totalorder %s2841_s24, %s2290_s9 }
  0x52   : > { %v1417_v43 = vsel %vm2591_vm4, %v1412_v37, %v1416_v19  ;;  %v1456_v48 = vshll.u32 %v1971_v31, 16  ;;  %v1467_v52 = vor.u32 %v1466_v17, %v1463_v5  ;;  %v1470_v53 = vshll.u32 %v1973_v41, 16  ;;  %p2293_p2 = scmp.lt.s32.totalorder %s2291_s10, %s2285_s7 }
  0x53   : > { %v1431_v35 = vsel %vm2591_vm4, %v1426_v27, %v1430_v38  ;;  %v1440_v7 = vrot.slane %v1439_v28, 4  ;;  %v1444_v39 = vrot.slane %v1442_v32, 5  ;;  %v1454_v45 = vrot.slane %v1453_v40, 4 }
  0x54   : > { %v2007_v36 = vcombine.low %v1417_v43, %v1431_v35  ;;  %v1458_v46 = vrot.slane %v1456_v48, 5  ;;  %v1468_v47 = vrot.slane %v1467_v52, 4  ;;  %v1472_v13 = vrot.slane %v1470_v53, 5  ;;  %p2294_p3 = por %p2293_p2, %p2292_p1 }
  0x55   : > { %v1481_v56 = vor.u32 %v1480_v20, %v1477_v18  ;;  %v1484_v57 = vshll.u32 %v1975_v50, 16  ;;  %v1445_v44 = vsel %vm2591_vm4, %v1440_v7, %v1444_v39  ;;  %v1495_v59 = vor.u32 %v1494_v4, %v1491_v3 }
  0x56   : > { %2158 = vmatmul.mubr.msk.bf16.gmra.mxu0 %vm287_vm1, %v1984_v14  ;;  %2164 = vmatmul.mubr.msk.bf16.vlgmr.msra.gmra.mxu1 %vm287_vm1, %v2282_v42  ;;  %v1459_v51 = vsel %vm2591_vm4, %v1454_v45, %v1458_v46  ;;  %v1498_v10 = vshll.u32 %v1977_v55, 16  ;;  %v1509_v11 = vor.u32 %v1508_v34, %v1505_v23  ;;  %v1473_v12 = vsel %vm2591_vm4, %v1468_v47, %v1472_v13  ;;  %p2295_p5 = pnand %p2294_p3, %p2288_p0 }
  0x57   : > { %2173 = vmatprep.mubr.msk.bf16.mxu0 %vm287_vm1, %v2007_v36  ;;  %2167 = vmatprep.mubr.msk.bf16.mxu1 %vm287_vm1, %v2283_v54  ;;  %v1482_v15 = vrot.slane %v1481_v56, 4  ;;  %v1486_v60 = vrot.slane %v1484_v57, 5  ;;  %v1512_v61 = vshll.u32 %v1979_v58, 16  ;;  %v2008_v63 = vcombine.low %v1445_v44, %v1459_v51 }
  0x58   : > { %v1496_v1 = vrot.slane %v1495_v59, 4  ;;  %v1500_v5 = vrot.slane %v1498_v10, 5  ;;  %v1510_v6 = vrot.slane %v1509_v11, 4 }
  0x59   : > { %v1487_v62 = vsel %vm2591_vm4, %v1482_v15, %v1486_v60  ;;  %v1514_v8 = vrot.slane %v1512_v61, 5 }
  0x5a   : > { %v2009_v2 = vcombine.low %v1473_v12, %v1487_v62  ;;  %v1501_v16 = vsel %vm2591_vm4, %v1496_v1, %v1500_v5 }
  0x5b   : > { %v1515_v17 = vsel %vm2591_vm4, %v1510_v6, %v1514_v8 }
  0x5c   : > { %v2010_v18 = vcombine.low %v1501_v16, %v1515_v17 }
  0x5e   : > { %2174 = vmatmul.mubr.msk.bf16.vlgmr.msra.gmra.mxu0 %vm287_vm1, %v2008_v63  ;;  %2168 = vmatmul.mubr.msk.bf16.gmra.mxu1 %vm287_vm1, %v2284_v0 }
  0x5f   : > { %2177 = vmatprep.mubr.msk.bf16.mxu0 %vm287_vm1, %v2009_v2 }
  0x66   : > { %2178 = vmatmul.mubr.msk.bf16.gmra.mxu0 %vm287_vm1, %v2010_v18 }
  0xdd   : > { %v2095_v20 = vpop.f32.mrf.mxu0 }
  0xde   : > { %v2099_v21 = vpop.f32.mrf.mxu1 }
  0xdf   : > { %v338_v9 = vpop.f32.mrf.mxu0 }
  0xe0   : > { %v354_v14 = vpop.f32.mrf.mxu1 }
  0xe1   : > { %v2096_v25 = vpop.f32.mrf.mxu0 }
  0xe2   : > { %v2100_v22 = vpop.f32.mrf.mxu1 }
  0xe3   : > { %v341_v30 = vpop.f32.mrf.mxu0 }
  0xe4   : > { %v2819_v24 = vpop.f32.mrf.mxu1 }
  0xe6   : > { %v2105_v26 = vpop.f32.mrf.mxu1 }
  0xe7   : > { %v447_v51 = vadd.f32 %v2105_v26, %v2095_v20 }
  0xe8   : > { %v438_v29 = vpop.f32.mrf.mxu1 }
  0xe9   : > { %v439_v57 = vadd.f32 %v438_v29, %v338_v9 }
  0xea   : > { %v2106_v31 = vpop.f32.mrf.mxu1 }
  0xeb   : > { %v450_v59 = vadd.f32 %v2106_v31, %v2096_v25 }
  0xec   : > { %v2115_v3 = vpop.f32.mrf.mxu0  ;;  %v441_v4 = vpop.f32.mrf.mxu1 }
  0xed   : > { %v442_v10 = vadd.f32 %v441_v4, %v341_v30  ;;  %v680_v62 = vadd.f32 %v2115_v3, %v447_v51 }
  0xee   : > { %v647_v23 = vpop.f32.mrf.mxu0  ;;  %v2109_v49 = vpop.f32.mrf.mxu1 }
  0xef   : > { %v678_v11 = vadd.f32 %v647_v23, %v439_v57  ;;  %v463_v17 = vadd.f32 %v2109_v49, %v2099_v21 }
  0xf0   : > { %v2116_v33 = vpop.f32.mrf.mxu0  ;;  %v454_v34 = vpop.f32.mrf.mxu1 }
  0xf1   : > { %v681_v63 = vadd.f32 %v2116_v33, %v450_v59  ;;  %v455_v6 = vadd.f32 %v454_v34, %v354_v14 }
  0xf2   : > { %v650_v37 = vpop.f32.mrf.mxu0  ;;  %v2110_v19 = vpop.f32.mrf.mxu1 }
  0xf3   : > { %v679_v5 = vadd.f32 %v650_v37, %v442_v10  ;;  %v466_v18 = vadd.f32 %v2110_v19, %v2100_v22 }
  0xf4   : > { %v457_v27 = vpop.f32.mrf.mxu1 }
  0xf6   : > { %v2119_v38 = vpop.f32.mrf.mxu0  ;;  %v2125_v28 = vpop.f32.mrf.mxu1 }
  0xf7   : > { %v810_v8 = vadd.f32 %v2125_v28, %v680_v62  ;;  %v684_v3 = vadd.f32 %v2119_v38, %v463_v17 }
  0xf8   : > { %v663_v32 = vpop.f32.mrf.mxu0  ;;  %v777_v40 = vpop.f32.mrf.mxu1 }
  0xf9   : > { %v808_v0 = vadd.f32 %v777_v40, %v678_v11  ;;  %v682_v31 = vadd.f32 %v663_v32, %v455_v6  ;;  %v458_v40 = vadd.f32 %v457_v27, %v2819_v24 }
  0xfa   : > { %v2120_v41 = vpop.f32.mrf.mxu0  ;;  %v2126_v42 = vpop.f32.mrf.mxu1 }
  0xfb   : > { %v811_v16 = vadd.f32 %v2126_v42, %v681_v63  ;;  %v685_v33 = vadd.f32 %v2120_v41, %v466_v18 }
  0xfc   : > { %v666_v43 = vpop.f32.mrf.mxu0  ;;  %v780_v48 = vpop.f32.mrf.mxu1 }
  0xfd   : > { %v809_v25 = vadd.f32 %v780_v48, %v679_v5  ;;  %v683_v32 = vadd.f32 %v666_v43, %v458_v40 }
  0xfe   : > { %v2135_v50 = vpop.f32.mrf.mxu0  ;;  %v2129_v52 = vpop.f32.mrf.mxu1 }
  0xff   : > { %v932_v4 = vadd.f32 %v2135_v50, %v810_v8  ;;  %v814_v49 = vadd.f32 %v2129_v52, %v684_v3 }
 0x100   : > { %v899_v53 = vpop.f32.mrf.mxu0  ;;  %v793_v35 = vpop.f32.mrf.mxu1 }
 0x101   : > { %v930_v26 = vadd.f32 %v899_v53, %v808_v0  ;;  %v812_v28 = vadd.f32 %v793_v35, %v682_v31 }
 0x102   : > { %v2136_v7 = vpop.f32.mrf.mxu0  ;;  %v2130_v39 = vpop.f32.mrf.mxu1 }
 0x103   : > { %v933_v23 = vadd.f32 %v2136_v7, %v811_v16  ;;  %v815_v19 = vadd.f32 %v2130_v39, %v685_v33 }
 0x104   : > { %v902_v45 = vpop.f32.mrf.mxu0  ;;  %v796_v54 = vpop.f32.mrf.mxu1 }
 0x105   : > { %v931_v34 = vadd.f32 %v902_v45, %v809_v25  ;;  %v813_v59 = vadd.f32 %v796_v54, %v683_v32 }
 0x106   : > { %v2139_v36 = vpop.f32.mrf.mxu0  ;;  %v2145_v46 = vpop.f32.mrf.mxu1 }
 0x107   : > { %v1146_v21 = vadd.f32 %v2145_v46, %v932_v4  ;;  %v936_v27 = vadd.f32 %v2139_v36, %v814_v49 }
 0x108   : > { %v915_v47 = vpop.f32.mrf.mxu0  ;;  %v1113_v13 = vpop.f32.mrf.mxu1 }
 0x109   : > { %v1144_v57 = vadd.f32 %v1113_v13, %v930_v26  ;;  %v934_v41 = vadd.f32 %v915_v47, %v812_v28 }
 0x10a   : > { %v2140_v55 = vpop.f32.mrf.mxu0  ;;  %v2146_v56 = vpop.f32.mrf.mxu1 }
 0x10b   : > { %v1147_v22 = vadd.f32 %v2146_v56, %v933_v23  ;;  %v937_v13 = vadd.f32 %v2140_v55, %v815_v19 }
 0x10c   : > { %v2821_v58 = vpop.f32.mrf.mxu0  ;;  %v1116_v44 = vpop.f32.mrf.mxu1 }
 0x10d   : > { %v1145_v53 = vadd.f32 %v1116_v44, %v931_v34  ;;  %v935_v36 = vadd.f32 %v2821_v58, %v813_v59 }
 0x10e   : > { %v2155_v15 = vpop.f32.mrf.mxu0  ;;  %v2149_v60 = vpop.f32.mrf.mxu1 }
 0x10f   : > { %v1276_v51 = vadd.f32 %v2155_v15, %v1146_v21  ;;  %v1150_v43 = vadd.f32 %v2149_v60, %v936_v27 }
 0x110   : > { %v1243_v12 = vpop.f32.mrf.mxu0  ;;  %v1129_v61 = vpop.f32.mrf.mxu1 }
 0x111   : > { %v1274_v50 = vadd.f32 %v1243_v12, %v1144_v57  ;;  %v1148_v46 = vadd.f32 %v1129_v61, %v934_v41 }
 0x112   : > { %v2156_v1 = vpop.f32.mrf.mxu0  ;;  %v2150_v2 = vpop.f32.mrf.mxu1 }
 0x113   : > { %v1277_v24 = vadd.f32 %v2156_v1, %v1147_v22  ;;  %v1151_v12 = vadd.f32 %v2150_v2, %v937_v13 }
 0x114   : > { %v1246_v9 = vpop.f32.mrf.mxu0  ;;  %v1132_v20 = vpop.f32.mrf.mxu1 }
 0x115   : > { %v1275_v39 = vadd.f32 %v1246_v9, %v1145_v53  ;;  %v1149_v5 = vadd.f32 %v1132_v20, %v935_v36 }
 0x116   : > { %v2159_v29 = vpop.f32.mrf.mxu0  ;;  %v2165_v30 = vpop.f32.mrf.mxu1 }
 0x117   : > { %v1398_v56 = vadd.f32 %v2165_v30, %v1276_v51  ;;  %v1280_v1 = vadd.f32 %v2159_v29, %v1150_v43 }
 0x118   : > { %v1259_v37 = vpop.f32.mrf.mxu0  ;;  %v1365_v14 = vpop.f32.mrf.mxu1 }
 0x119   : > { %v1396_v35 = vadd.f32 %v1365_v14, %v1274_v50  ;;  %v1278_v15 = vadd.f32 %v1259_v37, %v1148_v46 }
 0x11a   : > { %v2160_v42 = vpop.f32.mrf.mxu0  ;;  %v2166_v48 = vpop.f32.mrf.mxu1 }
 0x11b   : > { %v1399_v44 = vadd.f32 %v2166_v48, %v1277_v24  ;;  %v1281_v61 = vadd.f32 %v2160_v42, %v1151_v12 }
 0x11c   : > { %v1262_v7 = vpop.f32.mrf.mxu0  ;;  %v1368_v38 = vpop.f32.mrf.mxu1 }
 0x11d   : > { %v1397_v47 = vadd.f32 %v1368_v38, %v1275_v39  ;;  %v1279_v20 = vadd.f32 %v1262_v7, %v1149_v5 }
 0x11e   : > { %v2175_v45 = vpop.f32.mrf.mxu0  ;;  %v2169_v52 = vpop.f32.mrf.mxu1 }
 0x11f   : > { %v1612_v62 = vadd.f32 %v2175_v45, %v1398_v56  ;;  %v1402_v18 = vadd.f32 %v2169_v52, %v1280_v1 }
 0x120   : > { %v1579_v10 = vpop.f32.mrf.mxu0  ;;  %v1381_v11 = vpop.f32.mrf.mxu1 }
 0x121   : > { %v1610_v55 = vadd.f32 %v1579_v10, %v1396_v35  ;;  %v1400_v60 = vadd.f32 %v1381_v11, %v1278_v15  ;;  %v1650_v31 = vmul.f32 %v1612_v62, %v1612_v62 }
 0x122   : > { %v2176_v54 = vpop.f32.mrf.mxu0  ;;  %v2170_v0 = vpop.f32.mrf.mxu1 }
 0x123   : > { %v1613_v63 = vadd.f32 %v2176_v54, %v1399_v44  ;;  %v1648_v17 = vmul.f32 %v1610_v55, %v1610_v55  ;;  %v1403_v26 = vadd.f32 %v2170_v0, %v1281_v61 }
 0x124   : > { %v1582_v6 = vpop.f32.mrf.mxu0  ;;  %v1384_v29 = vpop.f32.mrf.mxu1 }
 0x125   : > { %v2031_v8 = vpack.c.bf16 %v1613_v63, %v1612_v62  ;;  %v1611_v16 = vadd.f32 %v1582_v6, %v1397_v47  ;;  %v1651_v33 = vmul.f32 %v1613_v63, %v1613_v63  ;;  %v1401_v57 = vadd.f32 %v1384_v29, %v1279_v20 }
 0x126   : > { %v2179_v2 = vpop.f32.mrf.mxu0 }
 0x127   : > { %2043 = vst [vmem:[%s2829_s14 + $0x8] sm:$0xff] %v2031_v8   ;;  %v2026_v58 = vpack.c.bf16 %v1611_v16, %v1610_v55  ;;  %v1634_v9 = vadd.f32 %v1611_v16, %v1610_v55  ;;  %v1649_v25 = vmul.f32 %v1611_v16, %v1611_v16  ;;  %v1616_v14 = vadd.f32 %v2179_v2, %v1402_v18 }
 0x128   : > { %v1595_v30 = vpop.f32.mrf.mxu0 }
 0x129   : > { %2027 = vst [vmem:[%s2829_s14] sm:$0xff] %v2026_v58   ;;  %v1635_v4 = vadd.f32 %v1634_v9, %v1612_v62  ;;  %v1656_v23 = vadd.f32 %v1649_v25, %v1648_v17  ;;  %v1614_v3 = vadd.f32 %v1595_v30, %v1400_v60  ;;  %v1654_v38 = vmul.f32 %v1616_v14, %v1616_v14 }
 0x12a   : > { %v2180_v40 = vpop.f32.mrf.mxu0 }
 0x12b   : > { %v1657_v37 = vadd.f32 %v1656_v23, %v1650_v31  ;;  %v1636_v34 = vadd.f32 %v1635_v4, %v1613_v63  ;;  %v1617_v28 = vadd.f32 %v2180_v40, %v1403_v26  ;;  %v1652_v49 = vmul.f32 %v1614_v3, %v1614_v3 }
 0x12c   : > { %v1598_v21 = vpop.f32.mrf.mxu0 }
 0x12d   : > { %v1637_v22 = vadd.f32 %v1636_v34, %v1614_v3  ;;  %v1658_v19 = vadd.f32 %v1657_v37, %v1651_v33  ;;  %v2041_v42 = vpack.c.bf16 %v1617_v28, %v1616_v14  ;;  %v1615_v48 = vadd.f32 %v1598_v21, %v1401_v57 }
 0x12f   : > { %v1659_v53 = vadd.f32 %v1658_v19, %v1652_v49  ;;  %2045 = vst [vmem:[%s2829_s14 + $0x18] sm:$0xff] %v2041_v42   ;;  %v2036_v32 = vpack.c.bf16 %v1615_v48, %v1614_v3  ;;  %v1638_v50 = vadd.f32 %v1637_v22, %v1615_v48  ;;  %v1653_v7 = vmul.f32 %v1615_v48, %v1615_v48 }
 0x131   : > { %2044 = vst [vmem:[%s2829_s14 + $0x10] sm:$0xff] %v2036_v32   ;;  %v1639_v41 = vadd.f32 %v1638_v50, %v1616_v14  ;;  %v1660_v51 = vadd.f32 %v1659_v53, %v1653_v7 }
 0x132   : > { %2298 = shalt.err (!%p2295_p5)
}
 0x133   : > { %s2299_s11 = scalar_lea.hbm %s2839_s5, 512  ;;  %s2303_s26 = scalar_lea.hbm %s2963_s2, 1024 }
 0x134   : > { %p2300_p6 = scmp.ne.s32.totalorder %s2839_s5, %s2299_s11  ;;  %p2304_p10 = scmp.lt.s32.totalorder %s2839_s5, %s2963_s2 }
 0x135   : > { %p2305_p11 = scmp.lt.s32.totalorder %s2303_s26, %s2299_s11 }
 0x136   : > { %p2301_p7 = pnand %p2300_p6, %p2491_p4 }
 0x137   : > { %p2306_p12 = por %p2305_p11, %p2304_p10 }
 0x138   : > { %p2302_p9 = pneg %p2301_p7 }
 0x13a   : > { %p2307_p13 = pnand %p2306_p12, %p2302_p9 }
 0x13c   : > { %2310 = shalt.err (!%p2307_p13)
}
 0x13d   : > { %s2420_s7 = smov 64   ;;  %s2421_s8 = smov 4   ;;  %v1655_v24 = vmul.f32 %v1617_v28, %v1617_v28  ;;  %v1640_v27 = vadd.f32 %v1639_v41, %v1617_v28  ;;  %v1661_v13 = vadd.f32 %v1660_v51, %v1654_v38 }
 0x13e   : > { %2194 = dma.vmem_to_hbm [thread:$0]  (%p2491_p4), %s2841_s24, 512, %s2839_s5, %s1671_s6, %s2420_s7, %s2420_s7, %s2421_s8  }
 0x13f   : > { %v1641_v59 = vrot.slane %v1640_v27, 4  ;;  %v1662_v45 = vadd.f32 %v1661_v13, %v1655_v24  ;;  %s2869_s9 = sand.u32 1, %s1872_s21   ;;  %s2018_s10 = sshll.u32 %s2409_s18, 4 }
 0x140   : > { %s218_s11 = scalar_lea.vmem [#allocation4], %s2825_s12  ;;  %s224_s5 = scalar_lea.vmem [#allocation6], %s2825_s12 }
 0x141   : > { %v1663_v35 = vrot.slane %v1662_v45, 4  ;;  %v1642_v52 = vadd.f32 %v1641_v59, %v1640_v27  ;;  %s1711_s24 = sshll.u32 %s218_s11, 4  ;;  %s1725_s6 = sshll.u32 %s224_s5, 4  ;;  %s2881_s24 = int_to_ptr.vmem [resolvable:$true] %s1711_s24  ;;  %s2888_s6 = int_to_ptr.vmem [resolvable:$true] %s1725_s6 }
 0x142   : > { %s2879_s26 = scalar_lea.hbm %s2964_s3, %s2018_s10  ;;  %s2886_s29 = scalar_lea.hbm %s2965_s4, %s2018_s10 }
 0x143   : > { %v1643_v39 = vrot.slane %v1642_v52, 2  ;;  %v1664_v46 = vadd.f32 %v1663_v35, %v1662_v45  ;;  %s1676_s30 = scalar_lea.sflag [#allocation5], %s2869_s9  ;;  %s2311_s7 = scalar_lea.vmem %s2881_s24, 16 }
 0x144   : > { %p2312_p0 = scmp.ne.s32.totalorder %s2881_s24, %s2311_s7  ;;  %s2422_s8 = smov [#allocation4]  }
 0x145   : > { %v1644_v56 = vadd.f32 %v1643_v39, %v1642_v52  ;;  %v1665_v44 = vrot.slane %v1664_v46, 2  ;;  %s2315_s13 = sshll.u32 %s2422_s8, 4  ;;  %s2316_s13 = int_to_ptr.vmem [resolvable:$false] %s2315_s13 }
 0x146   : > { %p2313_p1 = pnand %p2312_p0, %p2491_p4  ;;  %s2317_s14 = scalar_lea.vmem %s2316_s13, 32 }
 0x147   : > { %v1645_v43 = vrot.slane %v1644_v56, 1  ;;  %v1666_v10 = vadd.f32 %v1665_v44, %v1664_v46  ;;  %p2318_p3 = scmp.lt.s32.totalorder %s2881_s24, %s2316_s13  ;;  %p2319_p5 = scmp.lt.s32.totalorder %s2317_s14, %s2311_s7 }
 0x148   : > { %p2314_p2 = pneg %p2313_p1 }
 0x149   : > { %v1646_v11 = vadd.f32 %v1645_v43, %v1644_v56  ;;  %v1667_v12 = vrot.slane %v1666_v10, 1  ;;  %p2320_p6 = por %p2319_p5, %p2318_p3 }
 0x14b   : > { %1647 = vst [vmem:[%s218_s11] sm:$0x1] %v1646_v11  ;;  %v1668_v47 = vadd.f32 %v1667_v12, %v1666_v10  ;;  %p2321_p7 = pnand %p2320_p6, %p2314_p2 }
 0x14d   : > { %2324 = shalt.err (!%p2321_p7)
}
 0x14e   : > { %s2325_s10 = scalar_lea.hbm %s2879_s26, 16  ;;  %s2329_s21 = scalar_lea.hbm %s2964_s3, 32 }
 0x14f   : > { %p2326_p9 = scmp.ne.s32.totalorder %s2879_s26, %s2325_s10  ;;  %p2330_p12 = scmp.lt.s32.totalorder %s2879_s26, %s2964_s3 }
 0x150   : > { %p2331_p13 = scmp.lt.s32.totalorder %s2329_s21, %s2325_s10 }
 0x151   : > { %p2327_p10 = pnand %p2326_p9, %p2491_p4 }
 0x152   : > { %p2332_p0 = por %p2331_p13, %p2330_p12 }
 0x153   : > { %p2328_p11 = pneg %p2327_p10 }
 0x155   : > { %p2333_p1 = pnand %p2332_p0, %p2328_p11 }
 0x157   : > { %2336 = shalt.err (!%p2333_p1)
}
 0x158   : > { %2195 = dma.vmem_to_hbm [thread:$0]  (%p2491_p4), %s2881_s24, 16, %s2879_s26, %s1676_s30   ;;  %1669 = vst [vmem:[%s224_s5] sm:$0x1] %v1668_v47 }
 0x159   : > { %s2337_s22 = scalar_lea.vmem %s2888_s6, 16  ;;  %s2423_s7 = smov [#allocation6]  }
 0x15a   : > { %p2338_p2 = scmp.ne.s32.totalorder %s2888_s6, %s2337_s22  ;;  %s2341_s13 = sshll.u32 %s2423_s7, 4  ;;  %s2342_s13 = int_to_ptr.vmem [resolvable:$false] %s2341_s13 }
 0x15b   : > { %s2343_s14 = scalar_lea.vmem %s2342_s13, 32  ;;  %p2344_p6 = scmp.lt.s32.totalorder %s2888_s6, %s2342_s13 }
 0x15c   : > { %p2339_p3 = pnand %p2338_p2, %p2491_p4  ;;  %p2345_p7 = scmp.lt.s32.totalorder %s2343_s14, %s2337_s22 }
 0x15e   : > { %p2340_p5 = pneg %p2339_p3  ;;  %p2346_p9 = por %p2345_p7, %p2344_p6 }
 0x160   : > { %p2347_p10 = pnand %p2346_p9, %p2340_p5 }
 0x162   : > { %2350 = shalt.err (!%p2347_p10)
}
 0x163   : > { %s2351_s12 = scalar_lea.hbm %s2886_s29, 16  ;;  %s2355_s26 = scalar_lea.hbm %s2965_s4, 32 }
 0x164   : > { %p2352_p11 = scmp.ne.s32.totalorder %s2886_s29, %s2351_s12  ;;  %p2356_p0 = scmp.lt.s32.totalorder %s2886_s29, %s2965_s4 }
 0x165   : > { %p2357_p1 = scmp.lt.s32.totalorder %s2355_s26, %s2351_s12 }
 0x166   : > { %p2353_p12 = pnand %p2352_p11, %p2491_p4 }
 0x167   : > { %p2358_p2 = por %p2357_p1, %p2356_p0 }
 0x168   : > { %p2354_p13 = pneg %p2353_p12 }
 0x16a   : > { %p2359_p3 = pnand %p2358_p2, %p2354_p13 }
 0x16c   : > { %2362 = shalt.err (!%p2359_p3)
}
 0x16d   : > { %2196 = dma.vmem_to_hbm [thread:$0]  (%p2491_p4), %s2888_s6, 16, %s2886_s29, %s1676_s30  }
 0x16e PF: > { %p2210_p5 = scmp.ge.s32.totalorder %s2417_s20, 2  ;;  %s1737_s18 = sand.u32 1, %s2397_s15  }
 0x16f   : > { %s1738_s21 = scalar_lea.sflag [#allocation3], %s1737_s18 }
 0x170   : > { %p2201_p6 = pnand %p2210_p5, %p2500_p8 }
 0x172   : > { %p2202_p7 = pneg %p2201_p6 }
 0x174   : > { %2388 = dma.done.wait (%p2202_p7), %s1738_s21, 512  }
 0x175   : > { %2390 = vsyncadd (%p2202_p7), %s1738_s21, 4294966784  ;;  %s2971_s8 = sadd.s32 4294967294, %s2417_s20  }
 0x176   : > { %s1746_s25 = sand.u32 1, %s2971_s8  }
 0x177   : > { %s1747_s22 = scalar_lea.sflag [#allocation5], %s1746_s25 }
 0x178   : > { %2392 = dma.done.wait (%p2202_p7), %s1747_s22, 32  }
 0x179   : > { %2394 = vsyncadd (%p2202_p7), %s1747_s22, 4294967264  ;;  %s21_s20 = sadd.s32 1, %s2417_s20   ;;  %s2972_s15 = smov %s2401_s16 }
 0x17a   : > { %p18_p4 = scmp.ge.s32.totalorder %s21_s20, 4   ;;  %s2973_s16 = smov %s2405_s17 }
 0x17b   : > { %s2974_s17 = smov %s2506_s28  ;;  %s2975_s18 = smov %s2413_s19 }
 0x17c   : > { %s2976_s19 = smov %s2978_s23  ;;  %20 = sbr.rel (!%p18_p4) target bundleno = 6 (0x6), region = 109 }
 0x181   :  { %1759 = vsyncpa [#allocation3], 1 }
 0x182   :  { %1761 = vsyncpa [#allocation3 + $0x1], 1 }
 0x183   :  { %1762 = vsyncpa [#allocation5], 1 }
 0x184   :  { %1764 = vsyncpa [#allocation5 + $0x1], 1 }

</bundles_post_ra>
